<compile_context>
chip_gen: v5e
topology: v5e:2x2
jax: 0.10.0
libtpu: 0.0.40
codegen_flags: <defaults>
</compile_context>

<pallas_src>
import jax
import jax.numpy as jnp
from jax.experimental import pallas as pl

# ---------------- model hyper-params (small, consistent with the module) ----
B = 2            # batch
S = 8            # sequence length
D = 32           # d_model
H = 4            # attention heads
HD = D // H      # head dim
DFF = 64         # feed-forward hidden dim
NUM_LAYERS = 2
BS = B * S
EPS = 1e-6       # TODO(synk): tutorial LayerNormalization eps (nn.LayerNorm default is 1e-5)

# Pre-broadcast bias / LayerNorm slab, one (BS, DFF) tile per row:
#   0: [bq*scale | bk]   1: b1            2: [bo + bv@Wo | b2]
#   3: [g1 | be1]        4: [g2 | be2]    5: [gf | bef]
N_SLAB_ROWS = 6


def encoder_kernel(x_ref, wqkv_ref, w1_ref, w2_ref, slab_ref, out_ref):
    f32, bf16 = jnp.float32, jnp.bfloat16

    x = x_ref[...]           # (BS, D)          f32
    wqkv = wqkv_ref[...]     # (D, 2D + H*D)    bf16  [Wq*scale | Wk | Wv@Wo folded]
    w1 = w1_ref[...]         # (D, DFF)         bf16
    w2 = w2_ref[...]         # (DFF, D)         bf16

    # Bias / LN vectors were pre-broadcast to (BS, DFF) tiles at pack time, so
    # these are plain VMEM tile loads (vld slot) — no in-kernel broadcasts.
    b_qk = slab_ref[0]                                    # (BS, 2D)
    b1 = slab_ref[1]                                      # (BS, DFF)
    r = slab_ref[2]; bo, b2 = r[:, :D], r[:, D:]          # bo already = bo + bv @ Wo
    r = slab_ref[3]; g1, be1 = r[:, :D], r[:, D:]
    r = slab_ref[4]; g2, be2 = r[:, :D], r[:, D:]
    r = slab_ref[5]; gf, bef = r[:, :D], r[:, D:]

    def layer_norm(y, gamma, beta):
        # var = E[y^2] - mean^2: the two cross-lane reduces are independent, so
        # the XLU work overlaps instead of serializing.  Stats kept in f32.
        mean = jnp.mean(y, axis=-1, keepdims=True)
        mean_sq = jnp.mean(y * y, axis=-1, keepdims=True)
        var = mean_sq - mean * mean
        return (y - mean) * jax.lax.rsqrt(var + EPS) * gamma + beta

    def heads_to_batch(m, w):
        # (BS, H*w) -> (H*B, S, w): head h of batch b lands at leading index h*B + b.
        # Leading-dim concat + sublane-aligned reshapes only (no lane-dim splits).
        return jnp.concatenate(
            [m[:, h * w:(h + 1) * w].reshape(B, S, w) for h in range(H)], axis=0)

    def self_attention(y):
        # One fused projection (attention scale folded into Wq/bq, Wo folded into Wv).
        proj = jnp.dot(y.astype(bf16), wqkv, preferred_element_type=f32)   # (BS, 2D+H*D)
        qk = proj[:, :2 * D] + b_qk                    # single bias add for Q|K
        q3 = heads_to_batch(qk[:, :D], HD).astype(bf16)         # (H*B, S, HD)
        k3 = heads_to_batch(qk[:, D:], HD).astype(bf16)         # (H*B, S, HD)
        v3 = heads_to_batch(proj[:, 2 * D:], D).astype(bf16)    # (H*B, S, D), Wo-folded

        # All heads in single batched einsums + one softmax (f32 stats).
        s = jnp.einsum('bqd,bkd->bqk', q3, k3,
                       preferred_element_type=f32)               # (H*B, S, S)
        s = s - jnp.max(s, axis=-1, keepdims=True)
        e = jnp.exp(s)
        p = e * pl.reciprocal(jnp.sum(e, axis=-1, keepdims=True), approx=True)
        ctx = jnp.einsum('bqk,bkd->bqd', p.astype(bf16), v3,
                         preferred_element_type=f32)             # (H*B, S, D)
        # Head reduction = plain VALU sum over leading blocks; bo carries the
        # folded V/O bias (softmax rows sum to ~1).
        attn = ctx[0:B] + ctx[B:2 * B] + ctx[2 * B:3 * B] + ctx[3 * B:4 * B]
        return attn.reshape(BS, D) + bo

    def feed_forward(y):
        h1 = jnp.dot(y.astype(bf16), w1, preferred_element_type=f32) + b1
        h1 = jnp.maximum(h1, 0.0)
        return jnp.dot(h1.astype(bf16), w2, preferred_element_type=f32) + b2

    # The SAME layer (shared weights) applied NUM_LAYERS times, as in the
    # PyTorch module (the ModuleList holds the identical encoder_layer object).
    for _ in range(NUM_LAYERS):
        x = layer_norm(x + self_attention(x), g1, be1)
        x = layer_norm(x + feed_forward(x), g2, be2)

    out_ref[...] = layer_norm(x, gf, bef)   # final Encoder LayerNormalization


@jax.jit
def encoder_forward(x, packed):
    wqkv, w1, w2, slab = packed
    # No grid: the total working set (~25 KiB) lives in VMEM at once on every
    # TPU generation; any tiling would only add per-step overhead here.
    out = pl.pallas_call(
        encoder_kernel,
        out_shape=jax.ShapeDtypeStruct((BS, D), jnp.float32),
    )(x.reshape(BS, D), wqkv, w1, w2, slab)
    return out.reshape(B, S, D)


def init_params(key):
    ks = jax.random.split(key, 12)
    std = 0.02
    f32 = jnp.float32
    wq = jax.random.normal(ks[0], (D, D), f32) * std
    wk = jax.random.normal(ks[1], (D, D), f32) * std
    wv = jax.random.normal(ks[2], (D, D), f32) * std
    wo = jax.random.normal(ks[3], (D, D), f32) * std
    w1 = jax.random.normal(ks[4], (D, DFF), f32) * std
    w2 = jax.random.normal(ks[5], (DFF, D), f32) * std
    bq = jax.random.normal(ks[6], (D,), f32) * std
    bk = jax.random.normal(ks[7], (D,), f32) * std
    bv = jax.random.normal(ks[8], (D,), f32) * std
    bo = jax.random.normal(ks[9], (D,), f32) * std
    b1 = jax.random.normal(ks[10], (DFF,), f32) * std
    b2 = jax.random.normal(ks[11], (D,), f32) * std
    # LayerNormalization params (gamma=1, beta=0)
    g1, be1 = jnp.ones((D,), f32), jnp.zeros((D,), f32)
    g2, be2 = jnp.ones((D,), f32), jnp.zeros((D,), f32)
    gf, bef = jnp.ones((D,), f32), jnp.zeros((D,), f32)
    return (wq, wk, wv, wo, w1, w2, bq, bk, bv, bo, b1, b2,
            g1, be1, g2, be2, gf, bef)


def pack_params(params):
    """One-time packing (outside the hot path):
       * fold 1/sqrt(HD) into Wq/bq,
       * fold Wo into the V projection: Wv'_h = Wv[:,h] @ Wo[h],  bo' = bo + bv @ Wo,
       * fuse [Wq*scale | Wk | Wv'] into a single (D, 2D + H*D) bf16 matrix,
       * pre-broadcast all bias / LayerNorm vectors into a (6, BS, DFF) f32 slab."""
    (wq, wk, wv, wo, w1, w2, bq, bk, bv, bo, b1, b2,
     g1, be1, g2, be2, gf, bef) = params
    scale = 1.0 / float(HD) ** 0.5

    wv_fold = jnp.concatenate(
        [wv[:, h * HD:(h + 1) * HD] @ wo[h * HD:(h + 1) * HD, :] for h in range(H)],
        axis=1)                                                         # (D, H*D)
    wqkv = jnp.concatenate([wq * scale, wk, wv_fold], axis=1).astype(jnp.bfloat16)
    bo_fold = bo + bv @ wo                                              # (D,)

    w1b = w1.astype(jnp.bfloat16)
    w2b = w2.astype(jnp.bfloat16)

    rows = jnp.stack([
        jnp.concatenate([bq * scale, bk]),     # 0: Q|K bias   (2D = DFF)
        b1,                                    # 1: FFN bias 1 (DFF)
        jnp.concatenate([bo_fold, b2]),        # 2: attn-out bias | FFN bias 2
        jnp.concatenate([g1, be1]),            # 3: LN1 gamma | beta
        jnp.concatenate([g2, be2]),            # 4: LN2 gamma | beta
        jnp.concatenate([gf, bef]),            # 5: final LN gamma | beta
    ], axis=0).astype(jnp.float32)             # (6, DFF)
    slab = jnp.broadcast_to(rows[:, None, :], (N_SLAB_ROWS, BS, DFF))
    slab = jnp.asarray(slab, jnp.float32)      # materialize (6, BS, DFF)

    return (wqkv, w1b, w2b, slab)


if __name__ == "__main__":
    key = jax.random.PRNGKey(0)
    k_x, k_p = jax.random.split(key)
    x = jax.random.normal(k_x, (B, S, D), jnp.float32)
    packed = pack_params(init_params(k_p))

    out = encoder_forward(x, packed)
    jax.block_until_ready(out)
    assert out.shape == (B, S, D)
    assert bool(jnp.all(jnp.isfinite(out)))
    print("KERNEL_OK")
</pallas_src>

<mosaic_0001>
module attributes {stable_mosaic.version = 11 : i64} {
  func.func @encoder_kernel(%arg0: memref<16x32xf32, #tpu.memory_space<vmem>>, %arg1: memref<32x192xbf16, #tpu.memory_space<vmem>>, %arg2: memref<32x64xbf16, #tpu.memory_space<vmem>>, %arg3: memref<64x32xbf16, #tpu.memory_space<vmem>>, %arg4: memref<6x16x64xf32, #tpu.memory_space<vmem>>, %arg5: memref<16x32xf32, #tpu.memory_space<vmem>>) attributes {dimension_semantics = [], scalar_prefetch = 0 : i64, scratch_operands = 0 : i64, tpu.core_type = #tpu.core_type<tc>} {
    %c0 = arith.constant 0 : index
    %c0_0 = arith.constant 0 : index
    %0 = vector.load %arg0[%c0, %c0_0] : memref<16x32xf32, #tpu.memory_space<vmem>>, vector<16x32xf32>
    %c0_1 = arith.constant 0 : index
    %c0_2 = arith.constant 0 : index
    %1 = vector.load %arg1[%c0_1, %c0_2] : memref<32x192xbf16, #tpu.memory_space<vmem>>, vector<32x192xbf16>
    %c0_3 = arith.constant 0 : index
    %c0_4 = arith.constant 0 : index
    %2 = vector.load %arg2[%c0_3, %c0_4] : memref<32x64xbf16, #tpu.memory_space<vmem>>, vector<32x64xbf16>
    %c0_5 = arith.constant 0 : index
    %c0_6 = arith.constant 0 : index
    %3 = vector.load %arg3[%c0_5, %c0_6] : memref<64x32xbf16, #tpu.memory_space<vmem>>, vector<64x32xbf16>
    %c0_7 = arith.constant 0 : index
    %c0_8 = arith.constant 0 : index
    %c0_9 = arith.constant 0 : index
    %4 = vector.load %arg4[%c0_7, %c0_8, %c0_9] : memref<6x16x64xf32, #tpu.memory_space<vmem>>, vector<1x16x64xf32>
    %5 = vector.shape_cast %4 : vector<1x16x64xf32> to vector<16x64xf32>
    %c1 = arith.constant 1 : index
    %c0_10 = arith.constant 0 : index
    %c0_11 = arith.constant 0 : index
    %6 = vector.load %arg4[%c1, %c0_10, %c0_11] : memref<6x16x64xf32, #tpu.memory_space<vmem>>, vector<1x16x64xf32>
    %7 = vector.shape_cast %6 : vector<1x16x64xf32> to vector<16x64xf32>
    %c2 = arith.constant 2 : index
    %c0_12 = arith.constant 0 : index
    %c0_13 = arith.constant 0 : index
    %8 = vector.load %arg4[%c2, %c0_12, %c0_13] : memref<6x16x64xf32, #tpu.memory_space<vmem>>, vector<1x16x64xf32>
    %9 = vector.shape_cast %8 : vector<1x16x64xf32> to vector<16x64xf32>
    %10 = vector.extract_strided_slice %9 {offsets = [0, 0], sizes = [16, 32], strides = [1, 1]} : vector<16x64xf32> to vector<16x32xf32>
    %11 = vector.extract_strided_slice %9 {offsets = [0, 32], sizes = [16, 32], strides = [1, 1]} : vector<16x64xf32> to vector<16x32xf32>
    %c3 = arith.constant 3 : index
    %c0_14 = arith.constant 0 : index
    %c0_15 = arith.constant 0 : index
    %12 = vector.load %arg4[%c3, %c0_14, %c0_15] : memref<6x16x64xf32, #tpu.memory_space<vmem>>, vector<1x16x64xf32>
    %13 = vector.shape_cast %12 : vector<1x16x64xf32> to vector<16x64xf32>
    %14 = vector.extract_strided_slice %13 {offsets = [0, 0], sizes = [16, 32], strides = [1, 1]} : vector<16x64xf32> to vector<16x32xf32>
    %15 = vector.extract_strided_slice %13 {offsets = [0, 32], sizes = [16, 32], strides = [1, 1]} : vector<16x64xf32> to vector<16x32xf32>
    %c4 = arith.constant 4 : index
    %c0_16 = arith.constant 0 : index
    %c0_17 = arith.constant 0 : index
    %16 = vector.load %arg4[%c4, %c0_16, %c0_17] : memref<6x16x64xf32, #tpu.memory_space<vmem>>, vector<1x16x64xf32>
    %17 = vector.shape_cast %16 : vector<1x16x64xf32> to vector<16x64xf32>
    %18 = vector.extract_strided_slice %17 {offsets = [0, 0], sizes = [16, 32], strides = [1, 1]} : vector<16x64xf32> to vector<16x32xf32>
    %19 = vector.extract_strided_slice %17 {offsets = [0, 32], sizes = [16, 32], strides = [1, 1]} : vector<16x64xf32> to vector<16x32xf32>
    %c5 = arith.constant 5 : index
    %c0_18 = arith.constant 0 : index
    %c0_19 = arith.constant 0 : index
    %20 = vector.load %arg4[%c5, %c0_18, %c0_19] : memref<6x16x64xf32, #tpu.memory_space<vmem>>, vector<1x16x64xf32>
    %21 = vector.shape_cast %20 : vector<1x16x64xf32> to vector<16x64xf32>
    %22 = vector.extract_strided_slice %21 {offsets = [0, 0], sizes = [16, 32], strides = [1, 1]} : vector<16x64xf32> to vector<16x32xf32>
    %23 = vector.extract_strided_slice %21 {offsets = [0, 32], sizes = [16, 32], strides = [1, 1]} : vector<16x64xf32> to vector<16x32xf32>
    %24 = arith.truncf %0 : vector<16x32xf32> to vector<16x32xbf16>
    %cst = arith.constant dense<0.000000e+00> : vector<16x192xf32>
    %25 = tpu.matmul %24, %1, %cst {dimension_numbers = #tpu.dot_dimension_numbers<[1], [0], [0], [1], [0, 0, 1, 1], [], []>} : vector<16x32xbf16>, vector<32x192xbf16>, vector<16x192xf32> -> vector<16x192xf32>
    %26 = vector.extract_strided_slice %25 {offsets = [0, 0], sizes = [16, 64], strides = [1, 1]} : vector<16x192xf32> to vector<16x64xf32>
    %27 = arith.addf %26, %5 : vector<16x64xf32>
    %28 = vector.extract_strided_slice %27 {offsets = [0, 0], sizes = [16, 32], strides = [1, 1]} : vector<16x64xf32> to vector<16x32xf32>
    %29 = vector.extract_strided_slice %28 {offsets = [0, 0], sizes = [16, 8], strides = [1, 1]} : vector<16x32xf32> to vector<16x8xf32>
    %30 = vector.shape_cast %29 : vector<16x8xf32> to vector<2x8x8xf32>
    %31 = vector.extract_strided_slice %28 {offsets = [0, 8], sizes = [16, 8], strides = [1, 1]} : vector<16x32xf32> to vector<16x8xf32>
    %32 = vector.shape_cast %31 : vector<16x8xf32> to vector<2x8x8xf32>
    %33 = vector.extract_strided_slice %28 {offsets = [0, 16], sizes = [16, 8], strides = [1, 1]} : vector<16x32xf32> to vector<16x8xf32>
    %34 = vector.shape_cast %33 : vector<16x8xf32> to vector<2x8x8xf32>
    %35 = vector.extract_strided_slice %28 {offsets = [0, 24], sizes = [16, 8], strides = [1, 1]} : vector<16x32xf32> to vector<16x8xf32>
    %36 = vector.shape_cast %35 : vector<16x8xf32> to vector<2x8x8xf32>
    %37 = tpu.concatenate %30, %32, %34, %36 in 0 : vector<2x8x8xf32>, vector<2x8x8xf32>, vector<2x8x8xf32>, vector<2x8x8xf32> -> vector<8x8x8xf32>
    %38 = arith.truncf %37 : vector<8x8x8xf32> to vector<8x8x8xbf16>
    %39 = vector.extract_strided_slice %27 {offsets = [0, 32], sizes = [16, 32], strides = [1, 1]} : vector<16x64xf32> to vector<16x32xf32>
    %40 = vector.extract_strided_slice %39 {offsets = [0, 0], sizes = [16, 8], strides = [1, 1]} : vector<16x32xf32> to vector<16x8xf32>
    %41 = vector.shape_cast %40 : vector<16x8xf32> to vector<2x8x8xf32>
    %42 = vector.extract_strided_slice %39 {offsets = [0, 8], sizes = [16, 8], strides = [1, 1]} : vector<16x32xf32> to vector<16x8xf32>
    %43 = vector.shape_cast %42 : vector<16x8xf32> to vector<2x8x8xf32>
    %44 = vector.extract_strided_slice %39 {offsets = [0, 16], sizes = [16, 8], strides = [1, 1]} : vector<16x32xf32> to vector<16x8xf32>
    %45 = vector.shape_cast %44 : vector<16x8xf32> to vector<2x8x8xf32>
    %46 = vector.extract_strided_slice %39 {offsets = [0, 24], sizes = [16, 8], strides = [1, 1]} : vector<16x32xf32> to vector<16x8xf32>
    %47 = vector.shape_cast %46 : vector<16x8xf32> to vector<2x8x8xf32>
    %48 = tpu.concatenate %41, %43, %45, %47 in 0 : vector<2x8x8xf32>, vector<2x8x8xf32>, vector<2x8x8xf32>, vector<2x8x8xf32> -> vector<8x8x8xf32>
    %49 = arith.truncf %48 : vector<8x8x8xf32> to vector<8x8x8xbf16>
    %50 = vector.extract_strided_slice %25 {offsets = [0, 64], sizes = [16, 128], strides = [1, 1]} : vector<16x192xf32> to vector<16x128xf32>
    %51 = vector.extract_strided_slice %50 {offsets = [0, 0], sizes = [16, 32], strides = [1, 1]} : vector<16x128xf32> to vector<16x32xf32>
    %52 = vector.shape_cast %51 : vector<16x32xf32> to vector<2x8x32xf32>
    %53 = vector.extract_strided_slice %50 {offsets = [0, 32], sizes = [16, 32], strides = [1, 1]} : vector<16x128xf32> to vector<16x32xf32>
    %54 = vector.shape_cast %53 : vector<16x32xf32> to vector<2x8x32xf32>
    %55 = vector.extract_strided_slice %50 {offsets = [0, 64], sizes = [16, 32], strides = [1, 1]} : vector<16x128xf32> to vector<16x32xf32>
    %56 = vector.shape_cast %55 : vector<16x32xf32> to vector<2x8x32xf32>
    %57 = vector.extract_strided_slice %50 {offsets = [0, 96], sizes = [16, 32], strides = [1, 1]} : vector<16x128xf32> to vector<16x32xf32>
    %58 = vector.shape_cast %57 : vector<16x32xf32> to vector<2x8x32xf32>
    %59 = tpu.concatenate %52, %54, %56, %58 in 0 : vector<2x8x32xf32>, vector<2x8x32xf32>, vector<2x8x32xf32>, vector<2x8x32xf32> -> vector<8x8x32xf32>
    %60 = arith.truncf %59 : vector<8x8x32xf32> to vector<8x8x32xbf16>
    "tpu.trace_start"() <{level = 10 : i32, message = "bqd,bkd->bqk"}> : () -> ()
    %cst_20 = arith.constant dense<0.000000e+00> : vector<8x8x8xf32>
    %61 = tpu.matmul %38, %49, %cst_20 {dimension_numbers = #tpu.dot_dimension_numbers<[2], [2], [1], [1], [0, 0, 0, 1, 1, 1], [0], [0]>} : vector<8x8x8xbf16>, vector<8x8x8xbf16>, vector<8x8x8xf32> -> vector<8x8x8xf32>
    "tpu.trace_stop"() : () -> ()
    %cst_21 = arith.constant dense<0xFF800000> : vector<8x8xf32>
    %62 = vector.multi_reduction <maximumf>, %61, %cst_21 [2] : vector<8x8x8xf32> to vector<8x8xf32>
    %63 = vector.shape_cast %62 : vector<8x8xf32> to vector<8x8x1xf32>
    %64 = vector.broadcast %63 : vector<8x8x1xf32> to vector<8x8x8xf32>
    %65 = arith.subf %61, %64 : vector<8x8x8xf32>
    %66 = math.exp %65 : vector<8x8x8xf32>
    %cst_22 = arith.constant dense<0.000000e+00> : vector<8x8xf32>
    %67 = vector.multi_reduction <add>, %66, %cst_22 [2] : vector<8x8x8xf32> to vector<8x8xf32>
    %68 = vector.shape_cast %67 : vector<8x8xf32> to vector<8x8x1xf32>
    %69 = tpu.reciprocal %68 {approx = true} : vector<8x8x1xf32> -> vector<8x8x1xf32>
    %70 = vector.broadcast %69 : vector<8x8x1xf32> to vector<8x8x8xf32>
    %71 = arith.mulf %66, %70 : vector<8x8x8xf32>
    %72 = arith.truncf %71 : vector<8x8x8xf32> to vector<8x8x8xbf16>
    "tpu.trace_start"() <{level = 10 : i32, message = "bqk,bkd->bqd"}> : () -> ()
    %cst_23 = arith.constant dense<0.000000e+00> : vector<8x8x32xf32>
    %73 = tpu.matmul %72, %60, %cst_23 {dimension_numbers = #tpu.dot_dimension_numbers<[2], [1], [1], [2], [0, 0, 0, 1, 1, 2], [0], [0]>} : vector<8x8x8xbf16>, vector<8x8x32xbf16>, vector<8x8x32xf32> -> vector<8x8x32xf32>
    "tpu.trace_stop"() : () -> ()
    %74 = vector.extract_strided_slice %73 {offsets = [0, 0, 0], sizes = [2, 8, 32], strides = [1, 1, 1]} : vector<8x8x32xf32> to vector<2x8x32xf32>
    %75 = vector.extract_strided_slice %73 {offsets = [2, 0, 0], sizes = [2, 8, 32], strides = [1, 1, 1]} : vector<8x8x32xf32> to vector<2x8x32xf32>
    %76 = arith.addf %74, %75 : vector<2x8x32xf32>
    %77 = vector.extract_strided_slice %73 {offsets = [4, 0, 0], sizes = [2, 8, 32], strides = [1, 1, 1]} : vector<8x8x32xf32> to vector<2x8x32xf32>
    %78 = arith.addf %76, %77 : vector<2x8x32xf32>
    %79 = vector.extract_strided_slice %73 {offsets = [6, 0, 0], sizes = [2, 8, 32], strides = [1, 1, 1]} : vector<8x8x32xf32> to vector<2x8x32xf32>
    %80 = arith.addf %78, %79 : vector<2x8x32xf32>
    %81 = vector.shape_cast %80 : vector<2x8x32xf32> to vector<16x32xf32>
    %82 = arith.addf %81, %10 : vector<16x32xf32>
    %83 = arith.addf %0, %82 : vector<16x32xf32>
    %cst_24 = arith.constant dense<0.000000e+00> : vector<16xf32>
    %84 = vector.multi_reduction <add>, %83, %cst_24 [1] : vector<16x32xf32> to vector<16xf32>
    %85 = vector.shape_cast %84 : vector<16xf32> to vector<16x1xf32>
    %cst_25 = arith.constant 3.200000e+01 : f32
    %86 = vector.broadcast %cst_25 : f32 to vector<16x1xf32>
    %87 = arith.divf %85, %86 : vector<16x1xf32>
    %88 = arith.mulf %83, %83 : vector<16x32xf32>
    %cst_26 = arith.constant dense<0.000000e+00> : vector<16xf32>
    %89 = vector.multi_reduction <add>, %88, %cst_26 [1] : vector<16x32xf32> to vector<16xf32>
    %90 = vector.shape_cast %89 : vector<16xf32> to vector<16x1xf32>
    %cst_27 = arith.constant 3.200000e+01 : f32
    %91 = vector.broadcast %cst_27 : f32 to vector<16x1xf32>
    %92 = arith.divf %90, %91 : vector<16x1xf32>
    %93 = arith.mulf %87, %87 : vector<16x1xf32>
    %94 = arith.subf %92, %93 : vector<16x1xf32>
    %95 = vector.broadcast %87 : vector<16x1xf32> to vector<16x32xf32>
    %96 = arith.subf %83, %95 : vector<16x32xf32>
    %cst_28 = arith.constant 9.99999997E-7 : f32
    %97 = vector.broadcast %cst_28 : f32 to vector<16x1xf32>
    %98 = arith.addf %94, %97 : vector<16x1xf32>
    %99 = math.rsqrt %98 : vector<16x1xf32>
    %100 = vector.broadcast %99 : vector<16x1xf32> to vector<16x32xf32>
    %101 = arith.mulf %96, %100 : vector<16x32xf32>
    %102 = arith.mulf %101, %14 : vector<16x32xf32>
    %103 = arith.addf %102, %15 : vector<16x32xf32>
    %104 = arith.truncf %103 : vector<16x32xf32> to vector<16x32xbf16>
    %cst_29 = arith.constant dense<0.000000e+00> : vector<16x64xf32>
    %105 = tpu.matmul %104, %2, %cst_29 {dimension_numbers = #tpu.dot_dimension_numbers<[1], [0], [0], [1], [0, 0, 1, 1], [], []>} : vector<16x32xbf16>, vector<32x64xbf16>, vector<16x64xf32> -> vector<16x64xf32>
    %106 = arith.addf %105, %7 : vector<16x64xf32>
    %cst_30 = arith.constant 0.000000e+00 : f32
    %107 = vector.broadcast %cst_30 : f32 to vector<16x64xf32>
    %108 = arith.maximumf %106, %107 : vector<16x64xf32>
    %109 = arith.truncf %108 : vector<16x64xf32> to vector<16x64xbf16>
    %cst_31 = arith.constant dense<0.000000e+00> : vector<16x32xf32>
    %110 = tpu.matmul %109, %3, %cst_31 {dimension_numbers = #tpu.dot_dimension_numbers<[1], [0], [0], [1], [0, 0, 1, 1], [], []>} : vector<16x64xbf16>, vector<64x32xbf16>, vector<16x32xf32> -> vector<16x32xf32>
    %111 = arith.addf %110, %11 : vector<16x32xf32>
    %112 = arith.addf %103, %111 : vector<16x32xf32>
    %cst_32 = arith.constant dense<0.000000e+00> : vector<16xf32>
    %113 = vector.multi_reduction <add>, %112, %cst_32 [1] : vector<16x32xf32> to vector<16xf32>
    %114 = vector.shape_cast %113 : vector<16xf32> to vector<16x1xf32>
    %cst_33 = arith.constant 3.200000e+01 : f32
    %115 = vector.broadcast %cst_33 : f32 to vector<16x1xf32>
    %116 = arith.divf %114, %115 : vector<16x1xf32>
    %117 = arith.mulf %112, %112 : vector<16x32xf32>
    %cst_34 = arith.constant dense<0.000000e+00> : vector<16xf32>
    %118 = vector.multi_reduction <add>, %117, %cst_34 [1] : vector<16x32xf32> to vector<16xf32>
    %119 = vector.shape_cast %118 : vector<16xf32> to vector<16x1xf32>
    %cst_35 = arith.constant 3.200000e+01 : f32
    %120 = vector.broadcast %cst_35 : f32 to vector<16x1xf32>
    %121 = arith.divf %119, %120 : vector<16x1xf32>
    %122 = arith.mulf %116, %116 : vector<16x1xf32>
    %123 = arith.subf %121, %122 : vector<16x1xf32>
    %124 = vector.broadcast %116 : vector<16x1xf32> to vector<16x32xf32>
    %125 = arith.subf %112, %124 : vector<16x32xf32>
    %cst_36 = arith.constant 9.99999997E-7 : f32
    %126 = vector.broadcast %cst_36 : f32 to vector<16x1xf32>
    %127 = arith.addf %123, %126 : vector<16x1xf32>
    %128 = math.rsqrt %127 : vector<16x1xf32>
    %129 = vector.broadcast %128 : vector<16x1xf32> to vector<16x32xf32>
    %130 = arith.mulf %125, %129 : vector<16x32xf32>
    %131 = arith.mulf %130, %18 : vector<16x32xf32>
    %132 = arith.addf %131, %19 : vector<16x32xf32>
    %133 = arith.truncf %132 : vector<16x32xf32> to vector<16x32xbf16>
    %cst_37 = arith.constant dense<0.000000e+00> : vector<16x192xf32>
    %134 = tpu.matmul %133, %1, %cst_37 {dimension_numbers = #tpu.dot_dimension_numbers<[1], [0], [0], [1], [0, 0, 1, 1], [], []>} : vector<16x32xbf16>, vector<32x192xbf16>, vector<16x192xf32> -> vector<16x192xf32>
    %135 = vector.extract_strided_slice %134 {offsets = [0, 0], sizes = [16, 64], strides = [1, 1]} : vector<16x192xf32> to vector<16x64xf32>
    %136 = arith.addf %135, %5 : vector<16x64xf32>
    %137 = vector.extract_strided_slice %136 {offsets = [0, 0], sizes = [16, 32], strides = [1, 1]} : vector<16x64xf32> to vector<16x32xf32>
    %138 = vector.extract_strided_slice %137 {offsets = [0, 0], sizes = [16, 8], strides = [1, 1]} : vector<16x32xf32> to vector<16x8xf32>
    %139 = vector.shape_cast %138 : vector<16x8xf32> to vector<2x8x8xf32>
    %140 = vector.extract_strided_slice %137 {offsets = [0, 8], sizes = [16, 8], strides = [1, 1]} : vector<16x32xf32> to vector<16x8xf32>
    %141 = vector.shape_cast %140 : vector<16x8xf32> to vector<2x8x8xf32>
    %142 = vector.extract_strided_slice %137 {offsets = [0, 16], sizes = [16, 8], strides = [1, 1]} : vector<16x32xf32> to vector<16x8xf32>
    %143 = vector.shape_cast %142 : vector<16x8xf32> to vector<2x8x8xf32>
    %144 = vector.extract_strided_slice %137 {offsets = [0, 24], sizes = [16, 8], strides = [1, 1]} : vector<16x32xf32> to vector<16x8xf32>
    %145 = vector.shape_cast %144 : vector<16x8xf32> to vector<2x8x8xf32>
    %146 = tpu.concatenate %139, %141, %143, %145 in 0 : vector<2x8x8xf32>, vector<2x8x8xf32>, vector<2x8x8xf32>, vector<2x8x8xf32> -> vector<8x8x8xf32>
    %147 = arith.truncf %146 : vector<8x8x8xf32> to vector<8x8x8xbf16>
    %148 = vector.extract_strided_slice %136 {offsets = [0, 32], sizes = [16, 32], strides = [1, 1]} : vector<16x64xf32> to vector<16x32xf32>
    %149 = vector.extract_strided_slice %148 {offsets = [0, 0], sizes = [16, 8], strides = [1, 1]} : vector<16x32xf32> to vector<16x8xf32>
    %150 = vector.shape_cast %149 : vector<16x8xf32> to vector<2x8x8xf32>
    %151 = vector.extract_strided_slice %148 {offsets = [0, 8], sizes = [16, 8], strides = [1, 1]} : vector<16x32xf32> to vector<16x8xf32>
    %152 = vector.shape_cast %151 : vector<16x8xf32> to vector<2x8x8xf32>
    %153 = vector.extract_strided_slice %148 {offsets = [0, 16], sizes = [16, 8], strides = [1, 1]} : vector<16x32xf32> to vector<16x8xf32>
    %154 = vector.shape_cast %153 : vector<16x8xf32> to vector<2x8x8xf32>
    %155 = vector.extract_strided_slice %148 {offsets = [0, 24], sizes = [16, 8], strides = [1, 1]} : vector<16x32xf32> to vector<16x8xf32>
    %156 = vector.shape_cast %155 : vector<16x8xf32> to vector<2x8x8xf32>
    %157 = tpu.concatenate %150, %152, %154, %156 in 0 : vector<2x8x8xf32>, vector<2x8x8xf32>, vector<2x8x8xf32>, vector<2x8x8xf32> -> vector<8x8x8xf32>
    %158 = arith.truncf %157 : vector<8x8x8xf32> to vector<8x8x8xbf16>
    %159 = vector.extract_strided_slice %134 {offsets = [0, 64], sizes = [16, 128], strides = [1, 1]} : vector<16x192xf32> to vector<16x128xf32>
    %160 = vector.extract_strided_slice %159 {offsets = [0, 0], sizes = [16, 32], strides = [1, 1]} : vector<16x128xf32> to vector<16x32xf32>
    %161 = vector.shape_cast %160 : vector<16x32xf32> to vector<2x8x32xf32>
    %162 = vector.extract_strided_slice %159 {offsets = [0, 32], sizes = [16, 32], strides = [1, 1]} : vector<16x128xf32> to vector<16x32xf32>
    %163 = vector.shape_cast %162 : vector<16x32xf32> to vector<2x8x32xf32>
    %164 = vector.extract_strided_slice %159 {offsets = [0, 64], sizes = [16, 32], strides = [1, 1]} : vector<16x128xf32> to vector<16x32xf32>
    %165 = vector.shape_cast %164 : vector<16x32xf32> to vector<2x8x32xf32>
    %166 = vector.extract_strided_slice %159 {offsets = [0, 96], sizes = [16, 32], strides = [1, 1]} : vector<16x128xf32> to vector<16x32xf32>
    %167 = vector.shape_cast %166 : vector<16x32xf32> to vector<2x8x32xf32>
    %168 = tpu.concatenate %161, %163, %165, %167 in 0 : vector<2x8x32xf32>, vector<2x8x32xf32>, vector<2x8x32xf32>, vector<2x8x32xf32> -> vector<8x8x32xf32>
    %169 = arith.truncf %168 : vector<8x8x32xf32> to vector<8x8x32xbf16>
    "tpu.trace_start"() <{level = 10 : i32, message = "bqd,bkd->bqk"}> : () -> ()
    %cst_38 = arith.constant dense<0.000000e+00> : vector<8x8x8xf32>
    %170 = tpu.matmul %147, %158, %cst_38 {dimension_numbers = #tpu.dot_dimension_numbers<[2], [2], [1], [1], [0, 0, 0, 1, 1, 1], [0], [0]>} : vector<8x8x8xbf16>, vector<8x8x8xbf16>, vector<8x8x8xf32> -> vector<8x8x8xf32>
    "tpu.trace_stop"() : () -> ()
    %cst_39 = arith.constant dense<0xFF800000> : vector<8x8xf32>
    %171 = vector.multi_reduction <maximumf>, %170, %cst_39 [2] : vector<8x8x8xf32> to vector<8x8xf32>
    %172 = vector.shape_cast %171 : vector<8x8xf32> to vector<8x8x1xf32>
    %173 = vector.broadcast %172 : vector<8x8x1xf32> to vector<8x8x8xf32>
    %174 = arith.subf %170, %173 : vector<8x8x8xf32>
    %175 = math.exp %174 : vector<8x8x8xf32>
    %cst_40 = arith.constant dense<0.000000e+00> : vector<8x8xf32>
    %176 = vector.multi_reduction <add>, %175, %cst_40 [2] : vector<8x8x8xf32> to vector<8x8xf32>
    %177 = vector.shape_cast %176 : vector<8x8xf32> to vector<8x8x1xf32>
    %178 = tpu.reciprocal %177 {approx = true} : vector<8x8x1xf32> -> vector<8x8x1xf32>
    %179 = vector.broadcast %178 : vector<8x8x1xf32> to vector<8x8x8xf32>
    %180 = arith.mulf %175, %179 : vector<8x8x8xf32>
    %181 = arith.truncf %180 : vector<8x8x8xf32> to vector<8x8x8xbf16>
    "tpu.trace_start"() <{level = 10 : i32, message = "bqk,bkd->bqd"}> : () -> ()
    %cst_41 = arith.constant dense<0.000000e+00> : vector<8x8x32xf32>
    %182 = tpu.matmul %181, %169, %cst_41 {dimension_numbers = #tpu.dot_dimension_numbers<[2], [1], [1], [2], [0, 0, 0, 1, 1, 2], [0], [0]>} : vector<8x8x8xbf16>, vector<8x8x32xbf16>, vector<8x8x32xf32> -> vector<8x8x32xf32>
    "tpu.trace_stop"() : () -> ()
    %183 = vector.extract_strided_slice %182 {offsets = [0, 0, 0], sizes = [2, 8, 32], strides = [1, 1, 1]} : vector<8x8x32xf32> to vector<2x8x32xf32>
    %184 = vector.extract_strided_slice %182 {offsets = [2, 0, 0], sizes = [2, 8, 32], strides = [1, 1, 1]} : vector<8x8x32xf32> to vector<2x8x32xf32>
    %185 = arith.addf %183, %184 : vector<2x8x32xf32>
    %186 = vector.extract_strided_slice %182 {offsets = [4, 0, 0], sizes = [2, 8, 32], strides = [1, 1, 1]} : vector<8x8x32xf32> to vector<2x8x32xf32>
    %187 = arith.addf %185, %186 : vector<2x8x32xf32>
    %188 = vector.extract_strided_slice %182 {offsets = [6, 0, 0], sizes = [2, 8, 32], strides = [1, 1, 1]} : vector<8x8x32xf32> to vector<2x8x32xf32>
    %189 = arith.addf %187, %188 : vector<2x8x32xf32>
    %190 = vector.shape_cast %189 : vector<2x8x32xf32> to vector<16x32xf32>
    %191 = arith.addf %190, %10 : vector<16x32xf32>
    %192 = arith.addf %132, %191 : vector<16x32xf32>
    %cst_42 = arith.constant dense<0.000000e+00> : vector<16xf32>
    %193 = vector.multi_reduction <add>, %192, %cst_42 [1] : vector<16x32xf32> to vector<16xf32>
    %194 = vector.shape_cast %193 : vector<16xf32> to vector<16x1xf32>
    %cst_43 = arith.constant 3.200000e+01 : f32
    %195 = vector.broadcast %cst_43 : f32 to vector<16x1xf32>
    %196 = arith.divf %194, %195 : vector<16x1xf32>
    %197 = arith.mulf %192, %192 : vector<16x32xf32>
    %cst_44 = arith.constant dense<0.000000e+00> : vector<16xf32>
    %198 = vector.multi_reduction <add>, %197, %cst_44 [1] : vector<16x32xf32> to vector<16xf32>
    %199 = vector.shape_cast %198 : vector<16xf32> to vector<16x1xf32>
    %cst_45 = arith.constant 3.200000e+01 : f32
    %200 = vector.broadcast %cst_45 : f32 to vector<16x1xf32>
    %201 = arith.divf %199, %200 : vector<16x1xf32>
    %202 = arith.mulf %196, %196 : vector<16x1xf32>
    %203 = arith.subf %201, %202 : vector<16x1xf32>
    %204 = vector.broadcast %196 : vector<16x1xf32> to vector<16x32xf32>
    %205 = arith.subf %192, %204 : vector<16x32xf32>
    %cst_46 = arith.constant 9.99999997E-7 : f32
    %206 = vector.broadcast %cst_46 : f32 to vector<16x1xf32>
    %207 = arith.addf %203, %206 : vector<16x1xf32>
    %208 = math.rsqrt %207 : vector<16x1xf32>
    %209 = vector.broadcast %208 : vector<16x1xf32> to vector<16x32xf32>
    %210 = arith.mulf %205, %209 : vector<16x32xf32>
    %211 = arith.mulf %210, %14 : vector<16x32xf32>
    %212 = arith.addf %211, %15 : vector<16x32xf32>
    %213 = arith.truncf %212 : vector<16x32xf32> to vector<16x32xbf16>
    %cst_47 = arith.constant dense<0.000000e+00> : vector<16x64xf32>
    %214 = tpu.matmul %213, %2, %cst_47 {dimension_numbers = #tpu.dot_dimension_numbers<[1], [0], [0], [1], [0, 0, 1, 1], [], []>} : vector<16x32xbf16>, vector<32x64xbf16>, vector<16x64xf32> -> vector<16x64xf32>
    %215 = arith.addf %214, %7 : vector<16x64xf32>
    %cst_48 = arith.constant 0.000000e+00 : f32
    %216 = vector.broadcast %cst_48 : f32 to vector<16x64xf32>
    %217 = arith.maximumf %215, %216 : vector<16x64xf32>
    %218 = arith.truncf %217 : vector<16x64xf32> to vector<16x64xbf16>
    %cst_49 = arith.constant dense<0.000000e+00> : vector<16x32xf32>
    %219 = tpu.matmul %218, %3, %cst_49 {dimension_numbers = #tpu.dot_dimension_numbers<[1], [0], [0], [1], [0, 0, 1, 1], [], []>} : vector<16x64xbf16>, vector<64x32xbf16>, vector<16x32xf32> -> vector<16x32xf32>
    %220 = arith.addf %219, %11 : vector<16x32xf32>
    %221 = arith.addf %212, %220 : vector<16x32xf32>
    %cst_50 = arith.constant dense<0.000000e+00> : vector<16xf32>
    %222 = vector.multi_reduction <add>, %221, %cst_50 [1] : vector<16x32xf32> to vector<16xf32>
    %223 = vector.shape_cast %222 : vector<16xf32> to vector<16x1xf32>
    %cst_51 = arith.constant 3.200000e+01 : f32
    %224 = vector.broadcast %cst_51 : f32 to vector<16x1xf32>
    %225 = arith.divf %223, %224 : vector<16x1xf32>
    %226 = arith.mulf %221, %221 : vector<16x32xf32>
    %cst_52 = arith.constant dense<0.000000e+00> : vector<16xf32>
    %227 = vector.multi_reduction <add>, %226, %cst_52 [1] : vector<16x32xf32> to vector<16xf32>
    %228 = vector.shape_cast %227 : vector<16xf32> to vector<16x1xf32>
    %cst_53 = arith.constant 3.200000e+01 : f32
    %229 = vector.broadcast %cst_53 : f32 to vector<16x1xf32>
    %230 = arith.divf %228, %229 : vector<16x1xf32>
    %231 = arith.mulf %225, %225 : vector<16x1xf32>
    %232 = arith.subf %230, %231 : vector<16x1xf32>
    %233 = vector.broadcast %225 : vector<16x1xf32> to vector<16x32xf32>
    %234 = arith.subf %221, %233 : vector<16x32xf32>
    %cst_54 = arith.constant 9.99999997E-7 : f32
    %235 = vector.broadcast %cst_54 : f32 to vector<16x1xf32>
    %236 = arith.addf %232, %235 : vector<16x1xf32>
    %237 = math.rsqrt %236 : vector<16x1xf32>
    %238 = vector.broadcast %237 : vector<16x1xf32> to vector<16x32xf32>
    %239 = arith.mulf %234, %238 : vector<16x32xf32>
    %240 = arith.mulf %239, %18 : vector<16x32xf32>
    %241 = arith.addf %240, %19 : vector<16x32xf32>
    %cst_55 = arith.constant dense<0.000000e+00> : vector<16xf32>
    %242 = vector.multi_reduction <add>, %241, %cst_55 [1] : vector<16x32xf32> to vector<16xf32>
    %243 = vector.shape_cast %242 : vector<16xf32> to vector<16x1xf32>
    %cst_56 = arith.constant 3.200000e+01 : f32
    %244 = vector.broadcast %cst_56 : f32 to vector<16x1xf32>
    %245 = arith.divf %243, %244 : vector<16x1xf32>
    %246 = arith.mulf %241, %241 : vector<16x32xf32>
    %cst_57 = arith.constant dense<0.000000e+00> : vector<16xf32>
    %247 = vector.multi_reduction <add>, %246, %cst_57 [1] : vector<16x32xf32> to vector<16xf32>
    %248 = vector.shape_cast %247 : vector<16xf32> to vector<16x1xf32>
    %cst_58 = arith.constant 3.200000e+01 : f32
    %249 = vector.broadcast %cst_58 : f32 to vector<16x1xf32>
    %250 = arith.divf %248, %249 : vector<16x1xf32>
    %251 = arith.mulf %245, %245 : vector<16x1xf32>
    %252 = arith.subf %250, %251 : vector<16x1xf32>
    %253 = vector.broadcast %245 : vector<16x1xf32> to vector<16x32xf32>
    %254 = arith.subf %241, %253 : vector<16x32xf32>
    %cst_59 = arith.constant 9.99999997E-7 : f32
    %255 = vector.broadcast %cst_59 : f32 to vector<16x1xf32>
    %256 = arith.addf %252, %255 : vector<16x1xf32>
    %257 = math.rsqrt %256 : vector<16x1xf32>
    %258 = vector.broadcast %257 : vector<16x1xf32> to vector<16x32xf32>
    %259 = arith.mulf %254, %258 : vector<16x32xf32>
    %260 = arith.mulf %259, %22 : vector<16x32xf32>
    %261 = arith.addf %260, %23 : vector<16x32xf32>
    %c0_60 = arith.constant 0 : index
    %c0_61 = arith.constant 0 : index
    %262 = vector.load %arg5[%c0_60, %c0_61] : memref<16x32xf32, #tpu.memory_space<vmem>>, vector<16x32xf32>
    tpu.vector_store %arg5[%c0_60, %c0_61], %261 {strides = array<i32>} : memref<16x32xf32, #tpu.memory_space<vmem>>, vector<16x32xf32>,
    return
  }
}

</mosaic_0001>

<bundles_post_ra>
// kernel: encoder_forward.1
= control target key start
LH: loop header
LB: loop body
LE: loop exit
PB: predicated region body
PF: predicated region fallthrough
CT: control target
= control target key end

     0   :  { %10 = vsyncpa [#allocation3], 0  ;;  %s2585_s0 = inlined_call_operand.vmem [shape: f32[16,32], index: 0, kind: input, shape index: {}]   ;;  %s2586_s1 = inlined_call_operand.vmem [shape: bf16[32,192], index: 1, kind: input, shape index: {}]   ;;  %s2587_s2 = inlined_call_operand.hbm [shape: bf16[32,64], index: 2, kind: input, shape index: {}]   ;;  %s2588_s3 = inlined_call_operand.vmem [shape: bf16[64,32], index: 3, kind: input, shape index: {}]   ;;  %s2589_s4 = inlined_call_operand.hbm [shape: f32[6,16,64], index: 4, kind: input, shape index: {}]   ;;  %s2590_s5 = inlined_call_operand.hbm [shape: f32[16,32], index: 5, kind: output, shape index: {}]  }
   0x1   :  { %11 = vsyncpa [#allocation6], 0 }
   0x2   :  { %12 = vsyncpa [#allocation4], 0  ;;  %s21_s20 = sshll.u32 %s2587_s2, 4  ;;  %s2043_s21 = smov [#allocation2]   ;;  %s22_s20 = int_to_ptr.hbm [resolvable:$true] %s21_s20 }
   0x3   :  { %s23_s22 = sshll.u32 %s2043_s21, 4  ;;  %s36_s25 = sshll.u32 %s2589_s4, 4  ;;  %s24_s22 = int_to_ptr.vmem [resolvable:$true] %s23_s22  ;;  %s37_s25 = int_to_ptr.hbm [resolvable:$true] %s36_s25 }
   0x4   :  { %s2044_s26 = smov 64   ;;  %s2045_s27 = smov 4  }
   0x5   :  { %29 = dma.hbm_to_vmem [thread:$0]  %s22_s20, 256, %s24_s22, [#allocation3], %s2044_s26, %s2044_s26, %s2045_s27  }
   0x6   :  { %s2046_s28 = smov [#allocation5]   ;;  %s2047_s30 = smov 128  }
   0x7   :  { %s38_s29 = sshll.u32 %s2046_s28, 4  ;;  %s2048_s6 = smov 8   ;;  %s39_s29 = int_to_ptr.vmem [resolvable:$true] %s38_s29 }
   0x8   :  { %44 = dma.hbm_to_vmem [thread:$0]  %s37_s25, 1536, %s39_s29, [#allocation6], %s2047_s30, %s2047_s30, %s2048_s6  }
   0x9   :  { %2037 = dma.done.wait [#allocation3], 256  }
   0xa   :  { %2038 = vsyncadd [#allocation3], 4294967040 }
   0xb   :  { %2039 = dma.done.wait [#allocation6], 1536  }
   0xc   :  { %2040 = vsyncadd [#allocation6], 4294965760  ;;  %v1724_v0 = vld [vmem:[%s2586_s1 + $0x10] sm:$0xf]  ;;  %v1797_v1 = vld [vmem:[%s2586_s1 + $0x14] sm:$0xf0] }
   0xd   :  { %v1716_v2 = vld [vmem:[%s2586_s1] sm:$0xf]  ;;  %v2106_v3 = vor.u32 %v1797_v1, %v1724_v0  ;;  %v1795_v4 = vld [vmem:[%s2586_s1 + $0x4] sm:$0xf0]  ;;  %vm110_vm0 = vcmask 261120   ;;  %v2149_v16 = vld [vmem:[#allocation5] sm:$0xff] }
   0xe   :  { %v2112_v5 = vor.u32 %v1795_v4, %v1716_v2  ;;  %v2117_v6 = vld [vmem:[%s2585_s0] sm:$0xff]  ;;  %v2122_v7 = vld [vmem:[%s2585_s0 + $0x8] sm:$0xff]  ;;  %v1796_v9 = vld [vmem:[%s2586_s1 + $0x14] sm:$0xf]  ;;  %s2050_s24 = smov 120   ;;  %s2051_s25 = smov 96  }
   0xf   :  { %120 = vmatpush.bf16.msra.mxu0 %v2106_v3  ;;  %v89_v8 = vpack.c.bf16 %v2122_v7, %v2117_v6  ;;  %v1726_v10 = vld [vmem:[%s2586_s1 + $0x18] sm:$0xf0]  ;;  %v1794_v11 = vld [vmem:[%s2586_s1 + $0x4] sm:$0xf]  ;;  %v1718_v13 = vld [vmem:[%s2586_s1 + $0x8] sm:$0xf0] }
  0x10   :  { %v2137_v12 = vor.u32 %v1796_v9, %v1726_v10  ;;  %v2143_v14 = vor.u32 %v1794_v11, %v1718_v13  ;;  %v2151_v17 = vld [vmem:[#allocation5 + $0x8] sm:$0xff]  ;;  %s2049_s1 = smov 104   ;;  %s2052_s27 = smov 112   ;;  %vm207_vm1 = vcmask 64512   ;;  %vm499_vm2 = vcmask 1043456  }
  0x11   :  { %s2053_s28 = smov 32   ;;  %vm826_vm10 = vcmask 523264   ;;  %s1700_s14 = sshll.u32 %s2590_s5, 4  ;;  %s1701_s14 = int_to_ptr.hbm [resolvable:$true] %s1700_s14 }
  0x12   :  { %134 = vmatpush.bf16.msra.mxu1 %v2137_v12 }
  0x13   :  { %121 = vmatpush.bf16.msra.mxu0 %v2112_v5 }
  0x16   :  { %1730 = vmatmul.msk.bf16.vlgmr.msra.gmra.mxu0 %vm110_vm0, %v89_v8  ;;  %135 = vmatpush.bf16.msra.mxu1 %v2143_v14 }
  0x19   :  { %1731 = vmatmul.msk.bf16.vlgmr.msra.gmra.mxu1 %vm110_vm0, %v89_v8 }
  0x93   :  { %v2147_v15 = vpop.f32.mrf.mxu0 }
  0x94   :  { %v142_v18 = vadd.f32 %v2147_v15, %v2149_v16 }
  0x96   :  { %v164_v23 = vpack.c.bf16 %v142_v18, %v142_v18  ;;  %v137_v47 = vpop.f32.mrf.mxu1 }
  0x98   :  { %v203_v26 = vunpack.c.l.b16 %v164_v23 }
  0x9a   :  { %v204_v27 = vpack.c.b16 %v203_v26, %v203_v26 }
  0x9b   :  { %v2155_v19 = vpop.f32.mrf.mxu0 }
  0x9c   :  { %v143_v20 = vadd.f32 %v2155_v19, %v2151_v17  ;;  %v1832_v62 = vpack.i.bf16 %v2155_v19, %v2147_v15 }
  0x9e   :  { %v1827_v21 = vpack.i.bf16 %v143_v20, %v142_v18  ;;  %v165_v22 = vpack.c.bf16 %v143_v20, %v143_v20  ;;  %v139_v59 = vpop.f32.mrf.mxu1 }
  0x9f   :  { %v1842_v60 = vpack.i.bf16 %v139_v59, %v137_v47 }
  0xa0   :  { %1828 = vrot.lane.b32.xlu1 %v1827_v21, %s2049_s1  ;;  %1818 = vrot.lane.b32.xlu0 %v1827_v21, %s2050_s24  ;;  %v228_v24 = vunpack.c.l.b16 %v165_v22 }
  0xa2   :  { %v229_v25 = vpack.c.b16 %v228_v24, %v228_v24 }
  0xa4   :  { %230 = vrot.lane.b32.xlu2 %v229_v25, %s2051_s25 }
  0xa8   :  { %205 = vrot.lane.b32.xlu1 %v204_v27, %s2051_s25  ;;  %1823 = vrot.lane.b32.xlu0 %v1827_v21, %s2052_s27  ;;  %v195_v21 = vpack.c.bf16 %v2155_v19, %v2155_v19 }
  0xfe   :  { %v231_v28 = vpop.permute.xlu2 %230 }
  0xff   :  { %v236_v29 = vsel %vm207_vm1, %v231_v28, 0 }
 0x100   :  { %245 = vmatpush.bf16.xpose.msra.mxu3 %v236_v29 }
 0x107   :  { %1733 = vmatmul.msk.bf16.vlgmr.msra.gmra.mxu3 %vm207_vm1, %v165_v22 }
 0x112   :  { %v1829_v30 = vpop.permute.xlu1 %1828  ;;  %v1819_v31 = vpop.permute.xlu0 %1818 }
 0x113   :  { %v1821_v32 = vunpack.i.h.bf16 %v1819_v31  ;;  %v1820_v33 = vunpack.i.l.bf16 %v1819_v31  ;;  %v1830_v36 = vunpack.i.l.bf16 %v1829_v30  ;;  %v1831_v48 = vunpack.i.h.bf16 %v1829_v30 }
 0x115   :  { %v167_v34 = vpack.c.bf16 %v1821_v32, %v1821_v32  ;;  %v166_v35 = vpack.c.bf16 %v1820_v33, %v1820_v33  ;;  %v170_v41 = vpack.c.bf16 %v1830_v36, %v1830_v36  ;;  %v171_v54 = vpack.c.bf16 %v1831_v48, %v1831_v48 }
 0x117   :  { %v276_v37 = vunpack.c.l.b16 %v167_v34  ;;  %v252_v38 = vunpack.c.l.b16 %v166_v35  ;;  %v348_v51 = vunpack.c.l.b16 %v170_v41  ;;  %v372_v58 = vunpack.c.l.b16 %v171_v54 }
 0x119   :  { %v277_v39 = vpack.c.b16 %v276_v37, %v276_v37  ;;  %v253_v40 = vpack.c.b16 %v252_v38, %v252_v38  ;;  %v349_v57 = vpack.c.b16 %v348_v51, %v348_v51  ;;  %v373_v61 = vpack.c.b16 %v372_v58, %v372_v58 }
 0x11a   :  { %v206_v42 = vpop.permute.xlu1 %205  ;;  %v1824_v43 = vpop.permute.xlu0 %1823 }
 0x11b   :  { %v1826_v44 = vunpack.i.h.bf16 %v1824_v43  ;;  %v1825_v45 = vunpack.i.l.bf16 %v1824_v43  ;;  %278 = vrot.lane.b32.xlu0 %v277_v39, %s2051_s25  ;;  %254 = vrot.lane.b32.xlu2 %v253_v40, %s2051_s25  ;;  %v212_v46 = vsel %vm207_vm1, %v206_v42, 0 }
 0x11c   :  { %221 = vmatpush.bf16.xpose.msra.mxu2 %v212_v46 }
 0x11d   :  { %v169_v49 = vpack.c.bf16 %v1826_v44, %v1826_v44  ;;  %v168_v50 = vpack.c.bf16 %v1825_v45, %v1825_v45 }
 0x11f   :  { %v324_v52 = vunpack.c.l.b16 %v169_v49  ;;  %v300_v53 = vunpack.c.l.b16 %v168_v50 }
 0x121   :  { %v301_v55 = vpack.c.b16 %v300_v53, %v300_v53  ;;  %v325_v56 = vpack.c.b16 %v324_v52, %v324_v52 }
 0x123   :  { %1732 = vmatmul.msk.bf16.vlgmr.msra.gmra.mxu2 %vm207_vm1, %v164_v23  ;;  %302 = vrot.lane.b32.xlu1 %v301_v55, %s2051_s25  ;;  %v517_v23 = vunpack.c.l.b16 %v195_v21 }
 0x124   :  { %350 = vrot.lane.b32.xlu0 %v349_v57, %s2051_s25  ;;  %326 = vrot.lane.b32.xlu2 %v325_v56, %s2051_s25 }
 0x125   :  { %v518_v26 = vpack.c.b16 %v517_v23, %v517_v23 }
 0x12b   :  { %374 = vrot.lane.b32.xlu1 %v373_v61, %s2051_s25 }
 0x12c   :  { %1843 = vrot.lane.b32.xlu0 %v1842_v60, %s2053_s28  ;;  %1838 = vrot.lane.b32.xlu2 %v1842_v60, %s2044_s26 }
 0x133   :  { %1833 = vrot.lane.b32.xlu1 %v1832_v62, %s2051_s25 }
 0x175   :  { %v255_v63 = vpop.permute.xlu2 %254 }
 0x176   :  { %v260_v0 = vsel %vm207_vm1, %v255_v63, 0 }
 0x177   :  { %269 = vmatpush.bf16.xpose.msrb.mxu0 %v260_v0 }
 0x17e   :  { %v327_v1 = vpop.permute.xlu2 %326  ;;  %1734 = vmatmul.msk.bf16.vlgmr.msrb.gmra.mxu0 %vm207_vm1, %v166_v35 }
 0x17f   :  { %v332_v2 = vsel %vm207_vm1, %v327_v1, 0 }
 0x180   :  { %341 = vmatpush.bf16.xpose.msrb.mxu3 %v332_v2 }
 0x186   :  { %v2206_v45 = vpop.permute.xlu2 %1838 }
 0x187   :  { %1737 = vmatmul.msk.bf16.vlgmr.msrb.gmra.mxu3 %vm207_vm1, %v169_v49 }
 0x18a   :  { %v247_v4 = vpop.f32.mrf.mxu3 }
 0x18b   :  { %v398_v8 = vsel %vm207_vm1, %v247_v4, -inf }
 0x18c   :  { %399 = vmax.xlane.f32.xlu0 %v398_v8 }
 0x18d   :  { %v279_v9 = vpop.permute.xlu0 %278 }
 0x18e   :  { %v284_v10 = vsel %vm207_vm1, %v279_v9, 0 }
 0x18f   :  { %293 = vmatpush.bf16.xpose.msrb.mxu1 %v284_v10 }
 0x192   :  { %v249_v11 = vpop.f32.mrf.mxu3 }
 0x195   :  { %v303_v13 = vpop.permute.xlu1 %302 }
 0x196   :  { %v351_v18 = vpop.permute.xlu0 %350  ;;  %1735 = vmatmul.msk.bf16.vlgmr.msrb.gmra.mxu1 %vm207_vm1, %v167_v34  ;;  %v308_v20 = vsel %vm207_vm1, %v303_v13, 0 }
 0x197   :  { %v356_v22 = vsel %vm207_vm1, %v351_v18, 0  ;;  %317 = vmatpush.bf16.xpose.msrb.mxu2 %v308_v20 }
 0x198   :  { %365 = vmatpush.bf16.xpose.msra.mxu0 %v356_v22 }
 0x19d   :  { %v375_v24 = vpop.permute.xlu1 %374 }
 0x19e   :  { %v380_v25 = vsel %vm207_vm1, %v375_v24, 0  ;;  %1736 = vmatmul.msk.bf16.vlgmr.msrb.gmra.mxu2 %vm207_vm1, %v168_v50  ;;  %v2198_v36 = vpop.permute.xlu0 %1843 }
 0x19f   :  { %1738 = vmatmul.msk.bf16.vlgmr.msra.gmra.mxu0 %vm207_vm1, %v170_v41  ;;  %389 = vmatpush.bf16.xpose.msra.mxu1 %v380_v25  ;;  %v194_v41 = vpack.c.bf16 %v2147_v15, %v2147_v15 }
 0x1a0   :  { %519 = vrot.lane.b32.xlu0 %v518_v26, %s2044_s26 }
 0x1a1   :  { %v492_v42 = vunpack.c.l.b16 %v194_v41 }
 0x1a3   :  { %v493_v48 = vpack.c.b16 %v492_v42, %v492_v42 }
 0x1a5   :  { %v1834_v29 = vpop.permute.xlu1 %1833 }
 0x1a6   :  { %v223_v27 = vpop.f32.mrf.mxu2  ;;  %1739 = vmatmul.msk.bf16.vlgmr.msra.gmra.mxu1 %vm207_vm1, %v171_v54  ;;  %v1835_v30 = vunpack.i.l.bf16 %v1834_v29  ;;  %v1836_v8 = vunpack.i.h.bf16 %v1834_v29 }
 0x1a7   :  { %v395_v19 = vsel %vm207_vm1, %v223_v27, -inf }
 0x1a8   :  { %396 = vmax.xlane.f32.xlu2 %v395_v19  ;;  %v196_v31 = vpack.c.bf16 %v1835_v30, %v1835_v30  ;;  %v197_v9 = vpack.c.bf16 %v1836_v8, %v1836_v8 }
 0x1aa   :  { %v541_v32 = vunpack.c.l.b16 %v196_v31  ;;  %v565_v10 = vunpack.c.l.b16 %v197_v9 }
 0x1ac   :  { %v542_v33 = vpack.c.b16 %v541_v32, %v541_v32  ;;  %v566_v18 = vpack.c.b16 %v565_v10, %v565_v10  ;;  %v1845_v10 = vunpack.i.l.bf16 %v2198_v36 }
 0x1ae   :  { %v225_v28 = vpop.f32.mrf.mxu2 }
 0x1c0   :  { %543 = vrot.lane.b32.xlu2 %v542_v33, %s2044_s26 }
 0x1fb   :  { %v271_v34 = vpop.f32.mrf.mxu0 }
 0x1fc   :  { %v401_v35 = vsel %vm207_vm1, %v271_v34, -inf }
 0x1fd   :  { %402 = vmax.xlane.f32.xlu1 %v401_v35 }
 0x1ff   :  { %v400_v38 = vpop.xlane.xlu0 %399 }
 0x200   :  { %v420_v49 = vsub.f32 %v247_v4, %v400_v38 }
 0x202   :  { %v429_v15 = vmul.f32 1.442695, %v420_v49 }
 0x203   :  { %v273_v37 = vpop.f32.mrf.mxu0 }
 0x204   :  { %1877 = vpow2.f32 %v429_v15 }
 0x20a   :  { %v2200_v39 = vpop.f32.mrf.mxu3  ;;  %v1878_v60 = vpop.eup %1877 }
 0x20b   :  { %v410_v40 = vsel %vm207_vm1, %v2200_v39, -inf  ;;  %v446_v0 = vsel %vm207_vm1, %v1878_v60, 0.0 }
 0x20c   :  { %411 = vmax.xlane.f32.xlu0 %v410_v40 }
 0x212   :  { %v345_v43 = vpop.f32.mrf.mxu3  ;;  %v520_v44 = vpop.permute.xlu0 %519 }
 0x213   :  { %v525_v46 = vsel %vm499_vm2, %v520_v44, 0  ;;  %v2209_v47 = vpop.f32.mrf.mxu1 }
 0x214   :  { %534 = vmatpush.bf16.msra.mxu3 %v525_v46  ;;  %v404_v62 = vsel %vm207_vm1, %v2209_v47, -inf }
 0x216   :  { %494 = vrot.lane.b32.xlu1 %v493_v48, %s2044_s26 }
 0x21b   :  { %v297_v50 = vpop.f32.mrf.mxu1  ;;  %v397_v51 = vpop.xlane.xlu2 %396 }
 0x21c   :  { %v2212_v52 = vpop.f32.mrf.mxu0  ;;  %v419_v1 = vsub.f32 %v223_v27, %v397_v51 }
 0x21d   :  { %v413_v4 = vsel %vm207_vm1, %v2212_v52, -inf }
 0x21e   :  { %v427_v2 = vmul.f32 1.442695, %v419_v1 }
 0x220   :  { %1879 = vpow2.f32 %v427_v2  ;;  %v1846_v2 = vunpack.i.h.bf16 %v2198_v36 }
 0x221   :  { %v319_v53 = vpop.f32.mrf.mxu2 }
 0x222   :  { %v407_v54 = vsel %vm207_vm1, %v319_v53, -inf  ;;  %v201_v9 = vpack.c.bf16 %v1846_v2, %v1846_v2 }
 0x223   :  { %v391_v55 = vpop.f32.mrf.mxu1  ;;  %408 = vmax.xlane.f32.xlu2 %v407_v54  ;;  %v544_v56 = vpop.permute.xlu2 %543 }
 0x224   :  { %v369_v57 = vpop.f32.mrf.mxu0  ;;  %v549_v58 = vsel %vm499_vm2, %v544_v56, 0  ;;  %v416_v59 = vsel %vm207_vm1, %v391_v55, -inf }
 0x225   :  { %417 = vmax.xlane.f32.xlu0 %v416_v59  ;;  %558 = vmatpush.bf16.msrb.mxu0 %v549_v58  ;;  %v1840_v59 = vunpack.i.l.bf16 %v2206_v45 }
 0x226   :  { %v2222_v11 = vpop.eup %1879 }
 0x227   :  { %v443_v13 = vsel %vm207_vm1, %v2222_v11, 0.0 }
 0x229   :  { %v321_v61 = vpop.f32.mrf.mxu2 }
 0x22b   :  { %v393_v63 = vpop.f32.mrf.mxu1  ;;  %405 = vmax.xlane.f32.xlu2 %v404_v62 }
 0x22c   :  { %v1841_v63 = vunpack.i.h.bf16 %v2206_v45 }
 0x22d   :  { %447 = vadd.xlane.f32.xlu0 %v446_v0 }
 0x233   :  { %414 = vmax.xlane.f32.xlu2 %v413_v4  ;;  %v199_v4 = vpack.c.bf16 %v1841_v63, %v1841_v63 }
 0x240   :  { %444 = vadd.xlane.f32.xlu1 %v443_v13  ;;  %v613_v13 = vunpack.c.l.b16 %v199_v4 }
 0x241   :  { %567 = vrot.lane.b32.xlu0 %v566_v18, %s2044_s26  ;;  %v661_v18 = vunpack.c.l.b16 %v201_v9 }
 0x270   :  { %v403_v20 = vpop.xlane.xlu1 %402 }
 0x271   :  { %v421_v21 = vsub.f32 %v271_v34, %v403_v20  ;;  %v200_v20 = vpack.c.bf16 %v1845_v10, %v1845_v10 }
 0x273   :  { %v431_v22 = vmul.f32 1.442695, %v421_v21  ;;  %v614_v21 = vpack.c.b16 %v613_v13, %v613_v13  ;;  %v637_v45 = vunpack.c.l.b16 %v200_v20 }
 0x275   :  { %1881 = vpow2.f32 %v431_v22  ;;  %v638_v22 = vpack.c.b16 %v637_v45, %v637_v45 }
 0x27b   :  { %v2227_v23 = vpop.eup %1881 }
 0x27c   :  { %v449_v24 = vsel %vm207_vm1, %v2227_v23, 0.0 }
 0x27d   :  { %450 = vadd.xlane.f32.xlu2 %v449_v24 }
 0x27f   :  { %v412_v27 = vpop.xlane.xlu0 %411 }
 0x280   :  { %v424_v29 = vsub.f32 %v2200_v39, %v412_v27 }
 0x282   :  { %v437_v34 = vmul.f32 1.442695, %v424_v29 }
 0x288   :  { %v495_v25 = vpop.permute.xlu1 %494 }
 0x289   :  { %v501_v26 = vsel %vm499_vm2, %v495_v25, 0 }
 0x28a   :  { %510 = vmatpush.bf16.msra.mxu2 %v501_v26 }
 0x296   :  { %v409_v19 = vpop.xlane.xlu2 %408 }
 0x297   :  { %v423_v28 = vsub.f32 %v319_v53, %v409_v19 }
 0x298   :  { %v418_v30 = vpop.xlane.xlu0 %417 }
 0x299   :  { %v435_v31 = vmul.f32 1.442695, %v423_v28  ;;  %v426_v32 = vsub.f32 %v391_v55, %v418_v30 }
 0x29b   :  { %1883 = vpow2.f32 %v435_v31  ;;  %v441_v33 = vmul.f32 1.442695, %v426_v32 }
 0x29d   :  { %1885 = vpow2.f32 %v441_v33 }
 0x29e   :  { %v406_v35 = vpop.xlane.xlu2 %405  ;;  %1887 = vpow2.f32 %v437_v34 }
 0x29f   :  { %v422_v37 = vsub.f32 %v2209_v47, %v406_v35 }
 0x2a0   :  { %v448_v38 = vpop.xlane.xlu0 %447 }
 0x2a1   :  { %v2234_v40 = vpop.eup %1883  ;;  %v433_v41 = vmul.f32 1.442695, %v422_v37  ;;  %1889 = vrcp.f32 %v448_v38 }
 0x2a2   :  { %v455_v42 = vsel %vm207_vm1, %v2234_v40, 0.0 }
 0x2a3   :  { %v2238_v39 = vpop.eup %1885  ;;  %1891 = vpow2.f32 %v433_v41  ;;  %456 = vadd.xlane.f32.xlu2 %v455_v42 }
 0x2a4   :  { %v464_v43 = vsel %vm207_vm1, %v2238_v39, 0.0  ;;  %v2242_v44 = vpop.eup %1887 }
 0x2a5   :  { %465 = vadd.xlane.f32.xlu0 %v464_v43  ;;  %v458_v53 = vsel %vm207_vm1, %v2242_v44, 0.0 }
 0x2a6   :  { %v415_v46 = vpop.xlane.xlu2 %414 }
 0x2a7   :  { %v1890_v47 = vpop.eup %1889  ;;  %v425_v48 = vsub.f32 %v2212_v52, %v415_v46 }
 0x2a8   :  { %v476_v49 = vmul.f32 %v1890_v47, %v1878_v60  ;;  %v198_v60 = vpack.c.bf16 %v1840_v59, %v1840_v59 }
 0x2a9   :  { %v1892_v50 = vpop.eup %1891  ;;  %v439_v51 = vmul.f32 1.442695, %v425_v48 }
 0x2aa   :  { %v484_v15 = vpack.c.bf16 %v476_v49, %v476_v49  ;;  %v452_v54 = vsel %vm207_vm1, %v1892_v50, 0.0  ;;  %v589_v1 = vunpack.c.l.b16 %v198_v60 }
 0x2ab   :  { %1893 = vpow2.f32 %v439_v51  ;;  %459 = vadd.xlane.f32.xlu2 %v458_v53  ;;  %453 = vadd.xlane.f32.xlu1 %v452_v54 }
 0x2ac   :  { %1741 = vmatmul.msk.bf16.vlgmr.msra.gmra.mxu3 %vm207_vm1, %v484_v15  ;;  %v590_v8 = vpack.c.b16 %v589_v1, %v589_v1  ;;  %v2287_v1 = vld [vmem:[#allocation5 + $0x20] sm:$0xff] }
 0x2b1   :  { %v2249_v55 = vpop.eup %1893 }
 0x2b2   :  { %v461_v56 = vsel %vm207_vm1, %v2249_v55, 0.0 }
 0x2b3   :  { %v568_v52 = vpop.permute.xlu0 %567  ;;  %v445_v57 = vpop.xlane.xlu1 %444  ;;  %462 = vadd.xlane.f32.xlu1 %v461_v56 }
 0x2b4   :  { %v573_v58 = vsel %vm499_vm2, %v568_v52, 0  ;;  %1895 = vrcp.f32 %v445_v57 }
 0x2b5   :  { %582 = vmatpush.bf16.msrb.mxu1 %v573_v58 }
 0x2ba   :  { %v1896_v61 = vpop.eup %1895 }
 0x2bb   :  { %v475_v62 = vmul.f32 %v1896_v61, %v2222_v11  ;;  %v662_v11 = vpack.c.b16 %v661_v18, %v661_v18 }
 0x2bd   :  { %v483_v0 = vpack.c.bf16 %v475_v62, %v475_v62  ;;  %v2283_v62 = vld [vmem:[#allocation5 + $0x30] sm:$0xff] }
 0x2bf   :  { %1740 = vmatmul.msk.bf16.vlgmr.msra.gmra.mxu2 %vm207_vm1, %v483_v0 }
 0x2c3   :  { %591 = vrot.lane.b32.xlu2 %v590_v8, %s2044_s26 }
 0x2cb   :  { %615 = vrot.lane.b32.xlu2 %v614_v21, %s2044_s26  ;;  %v2299_v21 = vld [vmem:[#allocation5 + $0x28] sm:$0xff] }
 0x2cc   :  { %663 = vrot.lane.b32.xlu1 %v662_v11, %s2044_s26 }
 0x2d3   :  { %639 = vrot.lane.b32.xlu2 %v638_v22, %s2044_s26 }
 0x2d4   :  { %753 = vrot.lane.b32.xlu1 %v2283_v62, %s2051_s25 }
 0x2dc   :  { %820 = vrot.lane.b32.xlu1 %v2287_v1, %s2051_s25 }
 0x2e4   :  { %822 = vrot.lane.b32.xlu1 %v2299_v21, %s2051_s25 }
 0x2f0   :  { %v451_v24 = vpop.xlane.xlu2 %450 }
 0x2f1   :  { %1897 = vrcp.f32 %v451_v24 }
 0x2f7   :  { %v1898_v25 = vpop.eup %1897 }
 0x2f8   :  { %v477_v26 = vmul.f32 %v1898_v25, %v2227_v23 }
 0x2fa   :  { %v485_v27 = vpack.c.bf16 %v477_v26, %v477_v26 }
 0x2fc   :  { %1742 = vmatmul.msk.bf16.vlgmr.msrb.gmra.mxu0 %vm207_vm1, %v485_v27 }
 0x316   :  { %v457_v36 = vpop.xlane.xlu2 %456 }
 0x317   :  { %1899 = vrcp.f32 %v457_v36 }
 0x318   :  { %v466_v46 = vpop.xlane.xlu0 %465 }
 0x31d   :  { %v1900_v29 = vpop.eup %1899 }
 0x31e   :  { %v454_v19 = vpop.xlane.xlu1 %453  ;;  %v460_v28 = vpop.xlane.xlu2 %459  ;;  %v479_v31 = vmul.f32 %v1900_v29, %v2234_v40  ;;  %v2054_v29 = vmov 32.0  }
 0x31f   :  { %1901 = vrcp.f32 %v454_v19 }
 0x320   :  { %1903 = vrcp.f32 %v460_v28  ;;  %v487_v23 = vpack.c.bf16 %v479_v31, %v479_v31  ;;  %v82_v28 = vld [vmem:[#allocation5 + $0x38] sm:$0xff] }
 0x325   :  { %v1902_v30 = vpop.eup %1901 }
 0x326   :  { %v478_v32 = vmul.f32 %v1902_v30, %v1892_v50  ;;  %v592_v33 = vpop.permute.xlu2 %591  ;;  %v463_v37 = vpop.xlane.xlu1 %462 }
 0x327   :  { %v597_v34 = vsel %vm499_vm2, %v592_v33, 0  ;;  %v1904_v38 = vpop.eup %1903  ;;  %1905 = vrcp.f32 %v463_v37 }
 0x328   :  { %v486_v35 = vpack.c.bf16 %v478_v32, %v478_v32  ;;  %606 = vmatpush.bf16.msrb.mxu2 %v597_v34  ;;  %v480_v41 = vmul.f32 %v1904_v38, %v2242_v44  ;;  %1907 = vrcp.f32 %v466_v46 }
 0x329   :  { %1909 = vrcp.f32 %v2054_v29 }
 0x32a   :  { %1743 = vmatmul.msk.bf16.vlgmr.msrb.gmra.mxu1 %vm207_vm1, %v486_v35  ;;  %v488_v47 = vpack.c.bf16 %v480_v41, %v480_v41 }
 0x32b   :  { %1744 = vmatmul.msk.bf16.vlgmr.msrb.gmra.mxu2 %vm207_vm1, %v487_v23 }
 0x32d   :  { %v1906_v48 = vpop.eup %1905 }
 0x32e   :  { %v616_v42 = vpop.permute.xlu2 %615  ;;  %v481_v49 = vmul.f32 %v1906_v48, %v2249_v55  ;;  %v1908_v44 = vpop.eup %1907 }
 0x32f   :  { %v621_v43 = vsel %vm499_vm2, %v616_v42, 0  ;;  %v536_v40 = vpop.f32.mrf.mxu3  ;;  %v482_v54 = vmul.f32 %v1908_v44, %v2238_v39  ;;  %v1910_v30 = vpop.eup %1909 }
 0x330   :  { %630 = vmatpush.bf16.msrb.mxu3 %v621_v43  ;;  %v489_v53 = vpack.c.bf16 %v481_v49, %v481_v49  ;;  %v701_v31 = vmul.f32 32.0, %v1910_v30  ;;  %vm705_vm3 = vweird.f32 %v1910_v30  ;;  %v2318_v43 = vld [vmem:[#allocation2 + $0x8] sm:$0xff]  ;;  %v2322_v49 = vld [vmem:[#allocation2] sm:$0xff] }
 0x331   :  { %v490_v55 = vpack.c.bf16 %v482_v54, %v482_v54  ;;  %783 = vmatpush.bf16.msra.mxu2 %v2318_v43 }
 0x333   :  { %1745 = vmatmul.msk.bf16.vlgmr.msrb.gmra.mxu3 %vm207_vm1, %v488_v47 }
 0x335   :  { %784 = vmatpush.bf16.msra.mxu2 %v2322_v49 }
 0x336   :  { %v640_v50 = vpop.permute.xlu2 %639 }
 0x337   :  { %v645_v51 = vsel %vm499_vm2, %v640_v50, 0  ;;  %v538_v15 = vpop.f32.mrf.mxu3 }
 0x338   :  { %654 = vmatpush.bf16.msra.mxu0 %v645_v51 }
 0x33b   :  { %1746 = vmatmul.msk.bf16.vlgmr.msra.gmra.mxu0 %vm207_vm1, %v489_v53 }
 0x33c   :  { %916 = vmatpush.bf16.msrb.mxu0 %v2106_v3 }
 0x33e   :  { %v664_v56 = vpop.permute.xlu1 %663 }
 0x33f   :  { %v669_v52 = vsel %vm499_vm2, %v664_v56, 0 }
 0x340   :  { %917 = vmatpush.bf16.msrb.mxu0 %v2112_v5  ;;  %678 = vmatpush.bf16.msra.mxu1 %v669_v52 }
 0x342   :  { %v512_v57 = vpop.f32.mrf.mxu2 }
 0x343   :  { %1747 = vmatmul.msk.bf16.vlgmr.msra.gmra.mxu1 %vm207_vm1, %v490_v55 }
 0x344   :  { %930 = vmatpush.bf16.msrb.mxu1 %v2137_v12 }
 0x348   :  { %931 = vmatpush.bf16.msrb.mxu1 %v2143_v14 }
 0x34a   :  { %v514_v3 = vpop.f32.mrf.mxu2 }
 0x379   :  { %v560_v58 = vpop.f32.mrf.mxu0 }
 0x37a   :  { %v684_v5 = vadd.f32 %v560_v58, %v512_v57 }
 0x381   :  { %v562_v59 = vpop.f32.mrf.mxu0 }
 0x3a7   :  { %v584_v60 = vpop.f32.mrf.mxu1 }
 0x3a8   :  { %v685_v8 = vadd.f32 %v584_v60, %v536_v40 }
 0x3ae   :  { %v608_v61 = vpop.f32.mrf.mxu2 }
 0x3af   :  { %v586_v39 = vpop.f32.mrf.mxu1  ;;  %v686_v12 = vadd.f32 %v684_v5, %v608_v61 }
 0x3b6   :  { %v610_v63 = vpop.f32.mrf.mxu2  ;;  %v632_v0 = vpop.f32.mrf.mxu3 }
 0x3b7   :  { %v687_v13 = vadd.f32 %v685_v8, %v632_v0  ;;  %v2329_v8 = vpop.permute.xlu1 %753 }
 0x3b8   :  { %v656_v2 = vpop.f32.mrf.mxu0 }
 0x3b9   :  { %v688_v4 = vadd.f32 %v686_v12, %v656_v2 }
 0x3bb   :  { %v690_v14 = vadd.f32 %v688_v4, %v2287_v1 }
 0x3bd   :  { %v2293_v9 = vadd.f32 %v690_v14, %v2117_v6 }
 0x3be   :  { %v634_v10 = vpop.f32.mrf.mxu3 }
 0x3bf   :  { %v694_v18 = vsel %vm110_vm0, %v2293_v9, 0.0  ;;  %v709_v20 = vmul.f32 %v2293_v9, %v2293_v9 }
 0x3c0   :  { %v680_v11 = vpop.f32.mrf.mxu1  ;;  %695 = vadd.xlane.f32.xlu2 %v694_v18  ;;  %v658_v45 = vpop.f32.mrf.mxu0 }
 0x3c1   :  { %v689_v22 = vadd.f32 %v687_v13, %v680_v11  ;;  %v711_v24 = vsel %vm110_vm0, %v709_v20, 0.0  ;;  %v2339_v11 = vld [vmem:[%s2588_s3 + $0x18] sm:$0xff]  ;;  %v2351_v45 = vld [vmem:[%s2588_s3 + $0x8] sm:$0xff] }
 0x3c2   :  { %712 = vadd.xlane.f32.xlu0 %v711_v24  ;;  %834 = vmatpush.bf16.msra.mxu3 %v2339_v11 }
 0x3c3   :  { %v691_v6 = vadd.f32 %v689_v22, %v2299_v21  ;;  %v2357_v22 = vld [vmem:[%s2588_s3] sm:$0xff] }
 0x3c5   :  { %v2306_v25 = vadd.f32 %v691_v6, %v2122_v7  ;;  %v702_v7 = vsub.f32 1.0, %v701_v31  ;;  %v2360_v6 = vld [vmem:[#allocation5 + $0x10] sm:$0xff] }
 0x3c7   :  { %v697_v27 = vsel %vm110_vm0, %v2306_v25, 0.0  ;;  %v710_v36 = vmul.f32 %v2306_v25, %v2306_v25  ;;  %v703_v32 = vmul.f32 %v1910_v30, %v702_v7 }
 0x3c8   :  { %v682_v26 = vpop.f32.mrf.mxu1 }
 0x3c9   :  { %v714_v19 = vsel %vm110_vm0, %v710_v36, 0.0  ;;  %v704_v33 = vadd.f32 %v1910_v30, %v703_v32 }
 0x3ca   :  { %698 = vadd.xlane.f32.xlu0 %v697_v27 }
 0x3cb   :  { %v2314_v34 = vsel %vm705_vm3, %v1910_v30, %v704_v33  ;;  %v2367_v30 = vpop.permute.xlu1 %820 }
 0x3d2   :  { %715 = vadd.xlane.f32.xlu0 %v714_v19 }
 0x3e6   :  { %755 = vrot.lane.b32.xlu0 %v82_v28, %s2051_s25 }
 0x433   :  { %v696_v35 = vpop.xlane.xlu2 %695 }
 0x434   :  { %v707_v23 = vmul.f32 %v2314_v34, %v696_v35 }
 0x435   :  { %v713_v37 = vpop.xlane.xlu0 %712 }
 0x436   :  { %v719_v38 = vmul.f32 %v707_v23, %v707_v23  ;;  %v717_v41 = vmul.f32 %v713_v37, %v2314_v34  ;;  %v723_v39 = vsub.f32 %v2293_v9, %v707_v23  ;;  %v2371_v23 = vpop.permute.xlu1 %822 }
 0x438   :  { %v721_v42 = vsub.f32 %v717_v41, %v719_v38 }
 0x43a   :  { %v725_v40 = vadd.f32 1e-06, %v721_v42 }
 0x43c   :  { %1911 = vrsqrt.f32 %v725_v40  ;;  %vm733_vm5 = vweird.f32 %v725_v40 }
 0x43d   :  { %v699_v46 = vpop.xlane.xlu0 %698 }
 0x43e   :  { %v708_v48 = vmul.f32 %v2314_v34, %v699_v46  ;;  %v2376_v46 = vld [vmem:[#allocation5 + $0x40] sm:$0xff] }
 0x440   :  { %v720_v15 = vmul.f32 %v708_v48, %v708_v48  ;;  %v724_v12 = vsub.f32 %v2306_v25, %v708_v48  ;;  %v2362_v25 = vld [vmem:[#allocation5 + $0x18] sm:$0xff] }
 0x442   :  { %v1912_v47 = vpop.eup %1911 }
 0x443   :  { %v728_v50 = vmul.f32 %v1912_v47, %v725_v40  ;;  %vm734_vm4 = vweird.f32 %v1912_v47 }
 0x444   :  { %vm735_vm6 = vmor %vm733_vm5, %vm734_vm4 }
 0x445   :  { %v716_v51 = vpop.xlane.xlu0 %715  ;;  %v729_v44 = vmul.f32 %v1912_v47, %v728_v50  ;;  %v2381_v50 = vld [vmem:[#allocation5 + $0x48] sm:$0xff] }
 0x446   :  { %v718_v53 = vmul.f32 %v716_v51, %v2314_v34 }
 0x447   :  { %v730_v52 = vmul.f32 0.5, %v729_v44 }
 0x448   :  { %v722_v54 = vsub.f32 %v718_v53, %v720_v15 }
 0x449   :  { %v731_v55 = vsub.f32 1.5, %v730_v52 }
 0x44a   :  { %v726_v56 = vadd.f32 1e-06, %v722_v54 }
 0x44b   :  { %v732_v58 = vmul.f32 %v1912_v47, %v731_v55 }
 0x44c   :  { %1913 = vrsqrt.f32 %v726_v56  ;;  %vm743_vm8 = vweird.f32 %v726_v56 }
 0x44d   :  { %v736_v61 = vsel %vm735_vm6, %v1912_v47, %v732_v58 }
 0x44e   :  { %v747_v63 = vmul.f32 %v736_v61, %v723_v39 }
 0x450   :  { %v749_v4 = vmul.f32 %v747_v63, %v2283_v62  ;;  %v2345_v62 = vld [vmem:[%s2588_s3 + $0x10] sm:$0xff]  ;;  %s2055_s3 = smov [#allocation7]  }
 0x451   :  { %835 = vmatpush.bf16.msra.mxu3 %v2345_v62 }
 0x452   :  { %v1914_v57 = vpop.eup %1913  ;;  %v759_v18 = vadd.f32 %v2329_v8, %v749_v4 }
 0x453   :  { %v738_v3 = vmul.f32 %v1914_v57, %v726_v56  ;;  %vm744_vm7 = vweird.f32 %v1914_v57 }
 0x454   :  { %vm745_vm9 = vmor %vm743_vm8, %vm744_vm7 }
 0x455   :  { %v739_v59 = vmul.f32 %v1914_v57, %v738_v3  ;;  %836 = vmatpush.bf16.msra.mxu3 %v2351_v45 }
 0x457   :  { %v740_v60 = vmul.f32 0.5, %v739_v59 }
 0x458   :  { %v2331_v10 = vpop.permute.xlu0 %755 }
 0x459   :  { %v741_v5 = vsub.f32 1.5, %v740_v60  ;;  %837 = vmatpush.bf16.msra.mxu3 %v2357_v22 }
 0x45b   :  { %v742_v0 = vmul.f32 %v1914_v57, %v741_v5 }
 0x45d   :  { %v746_v2 = vsel %vm745_vm9, %v1914_v57, %v742_v0 }
 0x45e   :  { %v748_v14 = vmul.f32 %v746_v2, %v724_v12 }
 0x460   :  { %v750_v13 = vmul.f32 %v748_v14, %v82_v28 }
 0x462   :  { %v760_v9 = vadd.f32 %v2331_v10, %v750_v13 }
 0x464   :  { %v761_v20 = vpack.c.bf16 %v760_v9, %v759_v18 }
 0x466   :  { %1756 = vmatmul.msk.bf16.vlgmr.msra.gmra.mxu2 %vm110_vm0, %v761_v20 }
 0x4e9   :  { %v786_v24 = vpop.f32.mrf.mxu2 }
 0x4ea   :  { %v787_v26 = vadd.f32 %v786_v24, %v2360_v6 }
 0x4ec   :  { %v791_v19 = vmax.f32 %v787_v26, 0.0 }
 0x4f1   :  { %v788_v27 = vpop.f32.mrf.mxu2 }
 0x4f2   :  { %v789_v36 = vadd.f32 %v788_v27, %v2362_v25 }
 0x4f4   :  { %v792_v28 = vmax.f32 %v789_v36, 0.0 }
 0x4f6   :  { %v793_v29 = vpack.c.bf16 %v792_v28, %v791_v19 }
 0x4f8   :  { %1773 = vmatmul.msk.bf16.vlgmr.msra.gmra.mxu3 %vm826_vm10, %v793_v29 }
 0x57b   :  { %v839_v31 = vpop.f32.mrf.mxu3 }
 0x57c   :  { %v840_v7 = vadd.f32 %v839_v31, %v2367_v30 }
 0x57e   :  { %v844_v32 = vadd.f32 %v840_v7, %v759_v18 }
 0x580   :  { %v846_v33 = vsel %vm110_vm0, %v844_v32, 0.0  ;;  %v854_v35 = vmul.f32 %v844_v32, %v844_v32 }
 0x581   :  { %847 = vadd.xlane.f32.xlu2 %v846_v33 }
 0x582   :  { %v856_v37 = vsel %vm110_vm0, %v854_v35, 0.0 }
 0x583   :  { %v841_v38 = vpop.f32.mrf.mxu3  ;;  %857 = vadd.xlane.f32.xlu0 %v856_v37 }
 0x584   :  { %v842_v41 = vadd.f32 %v841_v38, %v2371_v23 }
 0x586   :  { %v845_v42 = vadd.f32 %v842_v41, %v760_v9 }
 0x588   :  { %v849_v40 = vsel %vm110_vm0, %v845_v42, 0.0  ;;  %v855_v47 = vmul.f32 %v845_v42, %v845_v42 }
 0x589   :  { %850 = vadd.xlane.f32.xlu1 %v849_v40 }
 0x58a   :  { %v859_v48 = vsel %vm110_vm0, %v855_v47, 0.0 }
 0x599   :  { %898 = vrot.lane.b32.xlu2 %v2376_v46, %s2051_s25 }
 0x5c2   :  { %860 = vadd.xlane.f32.xlu2 %v859_v48 }
 0x5da   :  { %900 = vrot.lane.b32.xlu2 %v2381_v50, %s2051_s25 }
 0x5f4   :  { %v848_v51 = vpop.xlane.xlu2 %847 }
 0x5f5   :  { %v852_v15 = vmul.f32 %v848_v51, %v2314_v34 }
 0x5f6   :  { %v858_v53 = vpop.xlane.xlu0 %857 }
 0x5f7   :  { %v864_v44 = vmul.f32 %v852_v15, %v852_v15  ;;  %v862_v54 = vmul.f32 %v858_v53, %v2314_v34  ;;  %v868_v24 = vsub.f32 %v844_v32, %v852_v15 }
 0x5f9   :  { %v866_v56 = vsub.f32 %v862_v54, %v864_v44 }
 0x5fb   :  { %v870_v52 = vadd.f32 1e-06, %v866_v56 }
 0x5fc   :  { %v2387_v55 = vpop.permute.xlu2 %898  ;;  %v851_v57 = vpop.xlane.xlu1 %850 }
 0x5fd   :  { %1915 = vrsqrt.f32 %v870_v52  ;;  %v853_v58 = vmul.f32 %v851_v57, %v2314_v34  ;;  %vm878_vm12 = vweird.f32 %v870_v52 }
 0x5ff   :  { %v865_v61 = vmul.f32 %v853_v58, %v853_v58  ;;  %v869_v19 = vsub.f32 %v845_v42, %v853_v58 }
 0x603   :  { %v1916_v3 = vpop.eup %1915 }
 0x604   :  { %v873_v59 = vmul.f32 %v1916_v3, %v870_v52  ;;  %vm879_vm11 = vweird.f32 %v1916_v3 }
 0x605   :  { %vm880_vm13 = vmor %vm878_vm12, %vm879_vm11 }
 0x606   :  { %v874_v5 = vmul.f32 %v1916_v3, %v873_v59 }
 0x608   :  { %v875_v12 = vmul.f32 0.5, %v874_v5 }
 0x60a   :  { %v876_v2 = vsub.f32 1.5, %v875_v12 }
 0x60c   :  { %v877_v14 = vmul.f32 %v1916_v3, %v876_v2 }
 0x60e   :  { %v881_v9 = vsel %vm880_vm13, %v1916_v3, %v877_v14 }
 0x60f   :  { %v892_v27 = vmul.f32 %v881_v9, %v868_v24 }
 0x611   :  { %v894_v29 = vmul.f32 %v892_v27, %v2376_v46 }
 0x613   :  { %v2396_v35 = vadd.f32 %v2387_v55, %v894_v29 }
 0x635   :  { %v861_v60 = vpop.xlane.xlu2 %860 }
 0x636   :  { %v863_v39 = vmul.f32 %v861_v60, %v2314_v34 }
 0x638   :  { %v867_v63 = vsub.f32 %v863_v39, %v865_v61 }
 0x63a   :  { %v871_v0 = vadd.f32 1e-06, %v867_v63 }
 0x63c   :  { %1917 = vrsqrt.f32 %v871_v0  ;;  %vm888_vm15 = vweird.f32 %v871_v0 }
 0x63d   :  { %v2392_v7 = vpop.permute.xlu2 %900 }
 0x642   :  { %v1918_v4 = vpop.eup %1917 }
 0x643   :  { %v883_v13 = vmul.f32 %v1918_v4, %v871_v0  ;;  %vm889_vm14 = vweird.f32 %v1918_v4 }
 0x644   :  { %vm890_vm3 = vmor %vm888_vm15, %vm889_vm14 }
 0x645   :  { %v884_v18 = vmul.f32 %v1918_v4, %v883_v13 }
 0x647   :  { %v885_v20 = vmul.f32 0.5, %v884_v18 }
 0x649   :  { %v886_v26 = vsub.f32 1.5, %v885_v20 }
 0x64b   :  { %v887_v36 = vmul.f32 %v1918_v4, %v886_v26 }
 0x64d   :  { %v891_v28 = vsel %vm890_vm3, %v1918_v4, %v887_v36 }
 0x64e   :  { %v893_v31 = vmul.f32 %v891_v28, %v869_v19 }
 0x650   :  { %v895_v33 = vmul.f32 %v893_v31, %v2381_v50 }
 0x652   :  { %v2399_v32 = vadd.f32 %v2392_v7, %v895_v33 }
 0x654   :  { %v906_v37 = vpack.c.bf16 %v2399_v32, %v2396_v35 }
 0x656   :  { %1774 = vmatmul.msk.bf16.vlgmr.msrb.gmra.mxu0 %vm110_vm0, %v906_v37  ;;  %1775 = vmatmul.msk.bf16.vlgmr.msrb.gmra.mxu1 %vm110_vm0, %v906_v37 }
 0x6d3   :  { %v2405_v38 = vpop.f32.mrf.mxu0  ;;  %v933_v63 = vpop.f32.mrf.mxu1 }
 0x6d4   :  { %v938_v41 = vadd.f32 %v2405_v38, %v2149_v16 }
 0x6d6   :  { %v960_v48 = vpack.c.bf16 %v938_v41, %v938_v41 }
 0x6d8   :  { %v999_v51 = vunpack.c.l.b16 %v960_v48 }
 0x6da   :  { %v1000_v15 = vpack.c.b16 %v999_v51, %v999_v51 }
 0x6db   :  { %v2409_v42 = vpop.f32.mrf.mxu0  ;;  %v935_v29 = vpop.f32.mrf.mxu1 }
 0x6dc   :  { %v939_v40 = vadd.f32 %v2409_v42, %v2151_v17  ;;  %v1872_v37 = vpack.i.bf16 %v935_v29, %v933_v63 }
 0x6de   :  { %v1857_v47 = vpack.i.bf16 %v939_v40, %v938_v41  ;;  %v961_v53 = vpack.c.bf16 %v939_v40, %v939_v40 }
 0x6e0   :  { %1858 = vrot.lane.b32.xlu0 %v1857_v47, %s2049_s1  ;;  %1853 = vrot.lane.b32.xlu2 %v1857_v47, %s2052_s27  ;;  %v1023_v44 = vunpack.c.l.b16 %v961_v53 }
 0x6e1   :  { %1848 = vrot.lane.b32.xlu1 %v1857_v47, %s2050_s24  ;;  %v1862_v47 = vpack.i.bf16 %v2409_v42, %v2405_v38 }
 0x6e2   :  { %v1024_v16 = vpack.c.b16 %v1023_v44, %v1023_v44 }
 0x6e8   :  { %1001 = vrot.lane.b32.xlu2 %v1000_v15, %s2051_s25 }
 0x6f0   :  { %1025 = vrot.lane.b32.xlu2 %v1024_v16, %s2051_s25 }
 0x73a   :  { %v1854_v54 = vpop.permute.xlu2 %1853 }
 0x73b   :  { %v1855_v56 = vunpack.i.l.bf16 %v1854_v54  ;;  %v1856_v4 = vunpack.i.h.bf16 %v1854_v54 }
 0x73d   :  { %v964_v17 = vpack.c.bf16 %v1855_v56, %v1855_v56  ;;  %v965_v27 = vpack.c.bf16 %v1856_v4, %v1856_v4 }
 0x73f   :  { %v1095_v52 = vunpack.c.l.b16 %v964_v17  ;;  %v1119_v31 = vunpack.c.l.b16 %v965_v27 }
 0x741   :  { %v1096_v57 = vpack.c.b16 %v1095_v52, %v1095_v52  ;;  %v1120_v41 = vpack.c.b16 %v1119_v31, %v1119_v31 }
 0x742   :  { %v1002_v3 = vpop.permute.xlu2 %1001 }
 0x743   :  { %v1007_v58 = vsel %vm207_vm1, %v1002_v3, 0  ;;  %1097 = vrot.lane.b32.xlu1 %v1096_v57, %s2051_s25 }
 0x744   :  { %1016 = vmatpush.bf16.xpose.msrb.mxu2 %v1007_v58 }
 0x74a   :  { %v1026_v59 = vpop.permute.xlu2 %1025 }
 0x74b   :  { %v1031_v60 = vsel %vm207_vm1, %v1026_v59, 0  ;;  %1776 = vmatmul.msk.bf16.vlgmr.msrb.gmra.mxu2 %vm207_vm1, %v960_v48  ;;  %v990_v48 = vpack.c.bf16 %v2405_v38, %v2405_v38 }
 0x74c   :  { %1040 = vmatpush.bf16.xpose.msrb.mxu3 %v1031_v60 }
 0x74d   :  { %v1287_v51 = vunpack.c.l.b16 %v990_v48 }
 0x74f   :  { %v1288_v15 = vpack.c.b16 %v1287_v51, %v1287_v51 }
 0x752   :  { %v1859_v61 = vpop.permute.xlu0 %1858 }
 0x753   :  { %v1861_v39 = vunpack.i.h.bf16 %v1859_v61  ;;  %v1849_v5 = vpop.permute.xlu1 %1848  ;;  %1777 = vmatmul.msk.bf16.vlgmr.msrb.gmra.mxu3 %vm207_vm1, %v961_v53  ;;  %v1860_v14 = vunpack.i.l.bf16 %v1859_v61 }
 0x754   :  { %v1851_v0 = vunpack.i.h.bf16 %v1849_v5  ;;  %v1850_v12 = vunpack.i.l.bf16 %v1849_v5 }
 0x755   :  { %v967_v2 = vpack.c.bf16 %v1861_v39, %v1861_v39  ;;  %v966_v36 = vpack.c.bf16 %v1860_v14, %v1860_v14 }
 0x756   :  { %v963_v13 = vpack.c.bf16 %v1851_v0, %v1851_v0  ;;  %v962_v18 = vpack.c.bf16 %v1850_v12, %v1850_v12 }
 0x757   :  { %v1167_v9 = vunpack.c.l.b16 %v967_v2  ;;  %v1143_v33 = vunpack.c.l.b16 %v966_v36 }
 0x758   :  { %v1071_v20 = vunpack.c.l.b16 %v963_v13  ;;  %v1047_v24 = vunpack.c.l.b16 %v962_v18 }
 0x759   :  { %v1168_v26 = vpack.c.b16 %v1167_v9, %v1167_v9  ;;  %v1144_v40 = vpack.c.b16 %v1143_v33, %v1143_v33 }
 0x75a   :  { %v1048_v19 = vpack.c.b16 %v1047_v24, %v1047_v24  ;;  %v1072_v28 = vpack.c.b16 %v1071_v20, %v1071_v20 }
 0x75b   :  { %1169 = vrot.lane.b32.xlu1 %v1168_v26, %s2051_s25 }
 0x75c   :  { %1049 = vrot.lane.b32.xlu0 %v1048_v19, %s2051_s25  ;;  %1073 = vrot.lane.b32.xlu2 %v1072_v28, %s2051_s25 }
 0x763   :  { %1873 = vrot.lane.b32.xlu1 %v1872_v37, %s2053_s28 }
 0x764   :  { %1121 = vrot.lane.b32.xlu0 %v1120_v41, %s2051_s25  ;;  %1145 = vrot.lane.b32.xlu2 %v1144_v40, %s2051_s25 }
 0x76c   :  { %1863 = vrot.lane.b32.xlu0 %v1862_v47, %s2051_s25  ;;  %1868 = vrot.lane.b32.xlu2 %v1872_v37, %s2044_s26 }
 0x774   :  { %1289 = vrot.lane.b32.xlu0 %v1288_v15, %s2044_s26 }
 0x7b5   :  { %v1098_v53 = vpop.permute.xlu1 %1097 }
 0x7b6   :  { %v1103_v44 = vsel %vm207_vm1, %v1098_v53, 0  ;;  %v1074_v16 = vpop.permute.xlu2 %1073 }
 0x7b7   :  { %v1079_v54 = vsel %vm207_vm1, %v1074_v16, 0  ;;  %1112 = vmatpush.bf16.xpose.msra.mxu2 %v1103_v44 }
 0x7b8   :  { %1088 = vmatpush.bf16.xpose.msra.mxu1 %v1079_v54 }
 0x7be   :  { %1780 = vmatmul.msk.bf16.vlgmr.msra.gmra.mxu2 %vm207_vm1, %v964_v17  ;;  %v1146_v38 = vpop.permute.xlu2 %1145 }
 0x7bf   :  { %1779 = vmatmul.msk.bf16.vlgmr.msra.gmra.mxu1 %vm207_vm1, %v963_v13  ;;  %v1151_v60 = vsel %vm207_vm1, %v1146_v38, 0 }
 0x7c6   :  { %v2457_v29 = vpop.permute.xlu2 %1868 }
 0x7cd   :  { %v1170_v56 = vpop.permute.xlu1 %1169 }
 0x7ce   :  { %v1175_v52 = vsel %vm207_vm1, %v1170_v56, 0  ;;  %v1050_v57 = vpop.permute.xlu0 %1049  ;;  %v1018_v3 = vpop.f32.mrf.mxu2 }
 0x7cf   :  { %v1055_v58 = vsel %vm207_vm1, %v1050_v57, 0  ;;  %1184 = vmatpush.bf16.xpose.msrb.mxu1 %v1175_v52  ;;  %v1190_v59 = vsel %vm207_vm1, %v1018_v3, -inf }
 0x7d0   :  { %1064 = vmatpush.bf16.xpose.msra.mxu0 %v1055_v58  ;;  %1191 = vmax.xlane.f32.xlu0 %v1190_v59 }
 0x7d6   :  { %v1122_v61 = vpop.permute.xlu0 %1121  ;;  %v1020_v17 = vpop.f32.mrf.mxu2  ;;  %1783 = vmatmul.msk.bf16.vlgmr.msrb.gmra.mxu1 %vm207_vm1, %v967_v2 }
 0x7d7   :  { %v1127_v39 = vsel %vm207_vm1, %v1122_v61, 0  ;;  %v1042_v5 = vpop.f32.mrf.mxu3  ;;  %1778 = vmatmul.msk.bf16.vlgmr.msra.gmra.mxu0 %vm207_vm1, %v962_v18 }
 0x7d8   :  { %1160 = vmatpush.bf16.xpose.msrb.mxu0 %v1151_v60  ;;  %1136 = vmatpush.bf16.xpose.msra.mxu3 %v1127_v39  ;;  %v1193_v63 = vsel %vm207_vm1, %v1042_v5, -inf  ;;  %v991_v39 = vpack.c.bf16 %v2409_v42, %v2409_v42 }
 0x7d9   :  { %1194 = vmax.xlane.f32.xlu2 %v1193_v63 }
 0x7da   :  { %v1311_v63 = vunpack.c.l.b16 %v991_v39 }
 0x7de   :  { %v1864_v0 = vpop.permute.xlu0 %1863 }
 0x7df   :  { %v1044_v12 = vpop.f32.mrf.mxu3  ;;  %1781 = vmatmul.msk.bf16.vlgmr.msra.gmra.mxu3 %vm207_vm1, %v965_v27  ;;  %v1865_v41 = vunpack.i.l.bf16 %v1864_v0  ;;  %v1866_v61 = vunpack.i.h.bf16 %v1864_v0 }
 0x7e1   :  { %v992_v47 = vpack.c.bf16 %v1865_v41, %v1865_v41  ;;  %v993_v17 = vpack.c.bf16 %v1866_v61, %v1866_v61 }
 0x7e3   :  { %v1335_v53 = vunpack.c.l.b16 %v992_v47 }
 0x7e5   :  { %v1336_v54 = vpack.c.b16 %v1335_v53, %v1335_v53 }
 0x7e6   :  { %v1290_v4 = vpop.permute.xlu0 %1289 }
 0x7e7   :  { %v1295_v14 = vsel %vm499_vm2, %v1290_v4, 0  ;;  %1782 = vmatmul.msk.bf16.vlgmr.msrb.gmra.mxu0 %vm207_vm1, %v966_v36  ;;  %v1312_v4 = vpack.c.b16 %v1311_v63, %v1311_v63 }
 0x7e8   :  { %1304 = vmatpush.bf16.msrb.mxu2 %v1295_v14 }
 0x83c   :  { %v1090_v2 = vpop.f32.mrf.mxu1 }
 0x83d   :  { %v1199_v13 = vsel %vm207_vm1, %v1090_v2, -inf }
 0x83e   :  { %1200 = vmax.xlane.f32.xlu0 %v1199_v13 }
 0x841   :  { %v2452_v9 = vpop.f32.mrf.mxu2 }
 0x842   :  { %v1202_v18 = vsel %vm207_vm1, %v2452_v9, -inf }
 0x843   :  { %v1192_v20 = vpop.xlane.xlu0 %1191  ;;  %1203 = vmax.xlane.f32.xlu2 %v1202_v18 }
 0x844   :  { %v1214_v24 = vsub.f32 %v1018_v3, %v1192_v20  ;;  %v1092_v26 = vpop.f32.mrf.mxu1 }
 0x846   :  { %v1222_v27 = vmul.f32 1.442695, %v1214_v24  ;;  %v2479_v24 = vpop.permute.xlu1 %1873 }
 0x848   :  { %1919 = vpow2.f32 %v1222_v27 }
 0x849   :  { %v1116_v19 = vpop.f32.mrf.mxu2 }
 0x84c   :  { %v1195_v40 = vpop.xlane.xlu2 %1194 }
 0x84d   :  { %v1215_v51 = vsub.f32 %v1042_v5, %v1195_v40  ;;  %v1359_v5 = vunpack.c.l.b16 %v993_v17 }
 0x84e   :  { %v1920_v28 = vpop.eup %1919 }
 0x84f   :  { %v1238_v36 = vsel %vm207_vm1, %v1920_v28, 0.0  ;;  %v1224_v44 = vmul.f32 1.442695, %v1215_v51  ;;  %v1360_v12 = vpack.c.b16 %v1359_v5, %v1359_v5 }
 0x850   :  { %1239 = vadd.xlane.f32.xlu0 %v1238_v36 }
 0x851   :  { %1921 = vpow2.f32 %v1224_v44 }
 0x853   :  { %v2459_v31 = vpop.f32.mrf.mxu1 }
 0x854   :  { %v1066_v33 = vpop.f32.mrf.mxu0  ;;  %v1211_v58 = vsel %vm207_vm1, %v2459_v31, -inf }
 0x855   :  { %v1196_v37 = vsel %vm207_vm1, %v1066_v33, -inf }
 0x856   :  { %1197 = vmax.xlane.f32.xlu1 %v1196_v37 }
 0x857   :  { %v2465_v57 = vpop.eup %1921 }
 0x858   :  { %v1241_v60 = vsel %vm207_vm1, %v2465_v57, 0.0 }
 0x85b   :  { %v1188_v48 = vpop.f32.mrf.mxu1 }
 0x85c   :  { %v1068_v15 = vpop.f32.mrf.mxu0 }
 0x862   :  { %v1138_v16 = vpop.f32.mrf.mxu3 }
 0x863   :  { %v1205_v38 = vsel %vm207_vm1, %v1138_v16, -inf }
 0x864   :  { %1206 = vmax.xlane.f32.xlu1 %v1205_v38  ;;  %v1162_v56 = vpop.f32.mrf.mxu0  ;;  %1337 = vrot.lane.b32.xlu0 %v1336_v54, %s2044_s26 }
 0x865   :  { %v1208_v52 = vsel %vm207_vm1, %v1162_v56, -inf }
 0x866   :  { %1209 = vmax.xlane.f32.xlu2 %v1208_v52 }
 0x86a   :  { %v1140_v3 = vpop.f32.mrf.mxu3 }
 0x86c   :  { %1212 = vmax.xlane.f32.xlu1 %v1211_v58  ;;  %v1164_v59 = vpop.f32.mrf.mxu0 }
 0x86e   :  { %1242 = vadd.xlane.f32.xlu2 %v1241_v60 }
 0x885   :  { %1361 = vrot.lane.b32.xlu1 %v1360_v12, %s2044_s26 }
 0x886   :  { %1313 = vrot.lane.b32.xlu2 %v1312_v4, %s2044_s26 }
 0x8b1   :  { %v1201_v14 = vpop.xlane.xlu0 %1200 }
 0x8b2   :  { %v1217_v13 = vsub.f32 %v1090_v2, %v1201_v14 }
 0x8b4   :  { %v1228_v18 = vmul.f32 1.442695, %v1217_v13 }
 0x8b6   :  { %1923 = vpow2.f32 %v1228_v18  ;;  %v1204_v26 = vpop.xlane.xlu2 %1203  ;;  %v1876_v18 = vunpack.i.h.bf16 %v2479_v24 }
 0x8b7   :  { %v1218_v41 = vsub.f32 %v2452_v9, %v1204_v26 }
 0x8b9   :  { %v1230_v47 = vmul.f32 1.442695, %v1218_v41 }
 0x8bc   :  { %v2475_v20 = vpop.eup %1923 }
 0x8bd   :  { %v1247_v0 = vsel %vm207_vm1, %v2475_v20, 0.0 }
 0x8be   :  { %1248 = vadd.xlane.f32.xlu0 %v1247_v0  ;;  %v997_v0 = vpack.c.bf16 %v1876_v18, %v1876_v18 }
 0x8c0   :  { %v1455_v26 = vunpack.c.l.b16 %v997_v0 }
 0x8c3   :  { %v1240_v42 = vpop.xlane.xlu0 %1239 }
 0x8c4   :  { %1925 = vrcp.f32 %v1240_v42  ;;  %v1870_v42 = vunpack.i.l.bf16 %v2457_v29 }
 0x8c9   :  { %v1198_v27 = vpop.xlane.xlu1 %1197 }
 0x8ca   :  { %v1926_v19 = vpop.eup %1925  ;;  %v1216_v36 = vsub.f32 %v1066_v33, %v1198_v27  ;;  %v994_v27 = vpack.c.bf16 %v1870_v42, %v1870_v42 }
 0x8cb   :  { %v1270_v37 = vmul.f32 %v1926_v19, %v1920_v28 }
 0x8cc   :  { %v1226_v2 = vmul.f32 1.442695, %v1216_v36  ;;  %v1456_v36 = vpack.c.b16 %v1455_v26, %v1455_v26  ;;  %v1383_v41 = vunpack.c.l.b16 %v994_v27 }
 0x8cd   :  { %v1278_v40 = vpack.c.bf16 %v1270_v37, %v1270_v37  ;;  %v1871_v37 = vunpack.i.h.bf16 %v2457_v29 }
 0x8ce   :  { %1927 = vpow2.f32 %v1226_v2 }
 0x8cf   :  { %1784 = vmatmul.msk.bf16.vlgmr.msrb.gmra.mxu2 %vm207_vm1, %v1278_v40  ;;  %1929 = vpow2.f32 %v1230_v47  ;;  %v995_v2 = vpack.c.bf16 %v1871_v37, %v1871_v37  ;;  %v1384_v40 = vpack.c.b16 %v1383_v41, %v1383_v41  ;;  %v1875_v47 = vunpack.i.l.bf16 %v2479_v24 }
 0x8d4   :  { %v2483_v48 = vpop.eup %1927 }
 0x8d5   :  { %v1244_v51 = vsel %vm207_vm1, %v2483_v48, 0.0  ;;  %v2488_v44 = vpop.eup %1929 }
 0x8d6   :  { %1245 = vadd.xlane.f32.xlu1 %v1244_v51  ;;  %v1338_v15 = vpop.permute.xlu0 %1337  ;;  %v1250_v3 = vsel %vm207_vm1, %v2488_v44, 0.0  ;;  %v1407_v51 = vunpack.c.l.b16 %v995_v2 }
 0x8d7   :  { %v1207_v53 = vpop.xlane.xlu1 %1206  ;;  %v1343_v33 = vsel %vm499_vm2, %v1338_v15, 0  ;;  %v996_v15 = vpack.c.bf16 %v1875_v47, %v1875_v47 }
 0x8d8   :  { %v1219_v28 = vsub.f32 %v1138_v16, %v1207_v53  ;;  %1352 = vmatpush.bf16.msra.mxu0 %v1343_v33  ;;  %v1408_v53 = vpack.c.b16 %v1407_v51, %v1407_v51 }
 0x8d9   :  { %v1210_v9 = vpop.xlane.xlu2 %1209  ;;  %v1431_v33 = vunpack.c.l.b16 %v996_v15 }
 0x8da   :  { %v1232_v54 = vmul.f32 1.442695, %v1219_v28  ;;  %v1220_v38 = vsub.f32 %v1162_v56, %v1210_v9 }
 0x8db   :  { %v1432_v28 = vpack.c.b16 %v1431_v33, %v1431_v33 }
 0x8dc   :  { %1931 = vpow2.f32 %v1232_v54  ;;  %v1234_v52 = vmul.f32 1.442695, %v1220_v38 }
 0x8de   :  { %1933 = vpow2.f32 %v1234_v52  ;;  %1251 = vadd.xlane.f32.xlu1 %v1250_v3 }
 0x8df   :  { %v1213_v58 = vpop.xlane.xlu1 %1212 }
 0x8e0   :  { %v1221_v59 = vsub.f32 %v2459_v31, %v1213_v58 }
 0x8e1   :  { %v1243_v60 = vpop.xlane.xlu2 %1242 }
 0x8e2   :  { %v2493_v61 = vpop.eup %1931  ;;  %v1236_v16 = vmul.f32 1.442695, %v1221_v59  ;;  %1935 = vrcp.f32 %v1243_v60 }
 0x8e3   :  { %v1253_v56 = vsel %vm207_vm1, %v2493_v61, 0.0 }
 0x8e4   :  { %v2495_v17 = vpop.eup %1933  ;;  %1937 = vpow2.f32 %v1236_v16 }
 0x8e5   :  { %v1256_v39 = vsel %vm207_vm1, %v2495_v17, 0.0 }
 0x8e6   :  { %1254 = vadd.xlane.f32.xlu1 %v1253_v56  ;;  %1257 = vadd.xlane.f32.xlu0 %v1256_v39 }
 0x8e8   :  { %v1936_v5 = vpop.eup %1935 }
 0x8e9   :  { %v1271_v63 = vmul.f32 %v1936_v5, %v2465_v57  ;;  %v1314_v31 = vpop.permute.xlu2 %1313 }
 0x8ea   :  { %v1938_v12 = vpop.eup %1937  ;;  %v1319_v4 = vsel %vm499_vm2, %v1314_v31, 0 }
 0x8eb   :  { %v1279_v14 = vpack.c.bf16 %v1271_v63, %v1271_v63  ;;  %1328 = vmatpush.bf16.msrb.mxu3 %v1319_v4  ;;  %v1259_v13 = vsel %vm207_vm1, %v1938_v12, 0.0 }
 0x8ec   :  { %1260 = vadd.xlane.f32.xlu2 %v1259_v13 }
 0x8ee   :  { %1785 = vmatmul.msk.bf16.vlgmr.msrb.gmra.mxu3 %vm207_vm1, %v1279_v14 }
 0x8f7   :  { %v1362_v19 = vpop.permute.xlu1 %1361 }
 0x8f8   :  { %v1367_v57 = vsel %vm499_vm2, %v1362_v19, 0 }
 0x8f9   :  { %1376 = vmatpush.bf16.msra.mxu1 %v1367_v57 }
 0x8fa   :  { %1457 = vrot.lane.b32.xlu0 %v1456_v36, %s2044_s26 }
 0x8ff   :  { %1385 = vrot.lane.b32.xlu1 %v1384_v40, %s2044_s26 }
 0x907   :  { %1409 = vrot.lane.b32.xlu1 %v1408_v53, %s2044_s26 }
 0x90f   :  { %1433 = vrot.lane.b32.xlu1 %v1432_v28, %s2044_s26  ;;  %s1698_s26 = sshll.u32 %s2055_s3, 4  ;;  %s1699_s26 = int_to_ptr.vmem [resolvable:$true] %s1698_s26 }
 0x931   :  { %v1249_v29 = vpop.xlane.xlu0 %1248 }
 0x932   :  { %1939 = vrcp.f32 %v1249_v29 }
 0x938   :  { %v1940_v9 = vpop.eup %1939 }
 0x939   :  { %v1273_v54 = vmul.f32 %v1940_v9, %v2475_v20 }
 0x93b   :  { %v1281_v38 = vpack.c.bf16 %v1273_v54, %v1273_v54 }
 0x93d   :  { %1787 = vmatmul.msk.bf16.vlgmr.msra.gmra.mxu1 %vm207_vm1, %v1281_v38 }
 0x949   :  { %v1246_v52 = vpop.xlane.xlu1 %1245 }
 0x94a   :  { %1941 = vrcp.f32 %v1246_v52 }
 0x950   :  { %v1942_v24 = vpop.eup %1941 }
 0x951   :  { %v1272_v3 = vmul.f32 %v1942_v24, %v2483_v48  ;;  %v1252_v16 = vpop.xlane.xlu1 %1251 }
 0x952   :  { %v1306_v58 = vpop.f32.mrf.mxu2 }
 0x953   :  { %v1280_v59 = vpack.c.bf16 %v1272_v3, %v1272_v3 }
 0x955   :  { %1786 = vmatmul.msk.bf16.vlgmr.msra.gmra.mxu0 %vm207_vm1, %v1280_v59 }
 0x959   :  { %v1258_v39 = vpop.xlane.xlu0 %1257  ;;  %v1255_v20 = vpop.xlane.xlu1 %1254 }
 0x95a   :  { %v1308_v60 = vpop.f32.mrf.mxu2 }
 0x95f   :  { %v1261_v56 = vpop.xlane.xlu2 %1260 }
 0x960   :  { %1943 = vrcp.f32 %v1261_v56 }
 0x961   :  { %1945 = vrcp.f32 %v1252_v16 }
 0x962   :  { %1947 = vrcp.f32 %v1255_v20 }
 0x963   :  { %1949 = vrcp.f32 %v1258_v39 }
 0x966   :  { %v1944_v5 = vpop.eup %1943 }
 0x967   :  { %v1277_v63 = vmul.f32 %v1944_v5, %v1938_v12  ;;  %v1946_v4 = vpop.eup %1945 }
 0x968   :  { %v1274_v13 = vmul.f32 %v1946_v4, %v2488_v44  ;;  %v1948_v12 = vpop.eup %1947 }
 0x969   :  { %v1285_v48 = vpack.c.bf16 %v1277_v63, %v1277_v63  ;;  %v1275_v27 = vmul.f32 %v1948_v12, %v2493_v61  ;;  %v1950_v37 = vpop.eup %1949 }
 0x96a   :  { %v1282_v26 = vpack.c.bf16 %v1274_v13, %v1274_v13 }
 0x96b   :  { %v1283_v36 = vpack.c.bf16 %v1275_v27, %v1275_v27 }
 0x96c   :  { %v1458_v31 = vpop.permute.xlu0 %1457 }
 0x96d   :  { %v1463_v14 = vsel %vm499_vm2, %v1458_v31, 0 }
 0x96e   :  { %1472 = vmatpush.bf16.msrb.mxu1 %v1463_v14 }
 0x971   :  { %v1330_v18 = vpop.f32.mrf.mxu3  ;;  %1791 = vmatmul.msk.bf16.vlgmr.msrb.gmra.mxu1 %vm207_vm1, %v1285_v48  ;;  %v1386_v0 = vpop.permute.xlu1 %1385 }
 0x972   :  { %v1391_v42 = vsel %vm499_vm2, %v1386_v0, 0 }
 0x973   :  { %1400 = vmatpush.bf16.msra.mxu2 %v1391_v42 }
 0x976   :  { %1788 = vmatmul.msk.bf16.vlgmr.msra.gmra.mxu2 %vm207_vm1, %v1282_v26 }
 0x977   :  { %1550 = vmatpush.bf16.msrb.mxu2 %v2318_v43  ;;  %v1276_v43 = vmul.f32 %v1950_v37, %v2495_v17 }
 0x979   :  { %v1332_v19 = vpop.f32.mrf.mxu3  ;;  %v1410_v44 = vpop.permute.xlu1 %1409 }
 0x97a   :  { %v1415_v57 = vsel %vm499_vm2, %v1410_v44, 0 }
 0x97b   :  { %1551 = vmatpush.bf16.msrb.mxu2 %v2322_v49  ;;  %1424 = vmatpush.bf16.msra.mxu3 %v1415_v57  ;;  %v1284_v49 = vpack.c.bf16 %v1276_v43, %v1276_v43 }
 0x97e   :  { %1789 = vmatmul.msk.bf16.vlgmr.msra.gmra.mxu3 %vm207_vm1, %v1283_v36 }
 0x97f   :  { %1568 = vmatpush.bf16.msrb.mxu3 %v2339_v11 }
 0x981   :  { %v1434_v41 = vpop.permute.xlu1 %1433 }
 0x982   :  { %v1439_v61 = vsel %vm499_vm2, %v1434_v41, 0 }
 0x983   :  { %1569 = vmatpush.bf16.msrb.mxu3 %v2345_v62  ;;  %1448 = vmatpush.bf16.msrb.mxu0 %v1439_v61 }
 0x986   :  { %1790 = vmatmul.msk.bf16.vlgmr.msrb.gmra.mxu0 %vm207_vm1, %v1284_v49 }
 0x987   :  { %1570 = vmatpush.bf16.msrb.mxu3 %v2351_v45 }
 0x98b   :  { %1571 = vmatpush.bf16.msrb.mxu3 %v2357_v22 }
 0x9ba   :  { %v1378_v2 = vpop.f32.mrf.mxu1 }
 0x9bb   :  { %v1479_v53 = vadd.f32 %v1378_v2, %v1330_v18 }
 0x9c2   :  { %v1380_v11 = vpop.f32.mrf.mxu1 }
 0x9d2   :  { %v1354_v40 = vpop.f32.mrf.mxu0 }
 0x9d3   :  { %v1478_v62 = vadd.f32 %v1354_v40, %v1306_v58 }
 0x9da   :  { %v1356_v47 = vpop.f32.mrf.mxu0 }
 0x9ee   :  { %v1474_v51 = vpop.f32.mrf.mxu1 }
 0x9f6   :  { %v1476_v15 = vpop.f32.mrf.mxu1 }
 0x9f9   :  { %v1402_v17 = vpop.f32.mrf.mxu2 }
 0x9fa   :  { %v1480_v29 = vadd.f32 %v1478_v62, %v1402_v17  ;;  %v1963_v17 = vld [vmem:[#allocation5 + $0x30] sm:$0xff] }
 0xa01   :  { %v1404_v33 = vpop.f32.mrf.mxu2  ;;  %v1426_v28 = vpop.f32.mrf.mxu3 }
 0xa02   :  { %v1481_v9 = vadd.f32 %v1479_v53, %v1426_v28  ;;  %v1964_v33 = vld [vmem:[#allocation5 + $0x38] sm:$0xff] }
 0xa03   :  { %v1450_v54 = vpop.f32.mrf.mxu0 }
 0xa04   :  { %v1483_v38 = vadd.f32 %v1481_v9, %v1474_v51  ;;  %v1482_v45 = vadd.f32 %v1480_v29, %v1450_v54 }
 0xa06   :  { %v1485_v52 = vadd.f32 %v1483_v38, %v2299_v21  ;;  %v1484_v22 = vadd.f32 %v1482_v45, %v2287_v1 }
 0xa08   :  { %v1486_v24 = vadd.f32 %v1484_v22, %v2396_v35  ;;  %v1487_v3 = vadd.f32 %v1485_v52, %v2399_v32 }
 0xa09   :  { %v1428_v59 = vpop.f32.mrf.mxu3 }
 0xa0a   :  { %v1491_v60 = vsel %vm110_vm0, %v1487_v3, 0.0  ;;  %v1488_v58 = vsel %vm110_vm0, %v1486_v24, 0.0  ;;  %v1496_v56 = vmul.f32 %v1486_v24, %v1486_v24  ;;  %v1497_v5 = vmul.f32 %v1487_v3, %v1487_v3 }
 0xa0b   :  { %1492 = vadd.xlane.f32.xlu1 %v1491_v60  ;;  %1489 = vadd.xlane.f32.xlu2 %v1488_v58  ;;  %v1452_v16 = vpop.f32.mrf.mxu0 }
 0xa0c   :  { %v1498_v39 = vsel %vm110_vm0, %v1496_v56, 0.0  ;;  %v1501_v21 = vsel %vm110_vm0, %v1497_v5, 0.0 }
 0xa13   :  { %1499 = vadd.xlane.f32.xlu2 %v1498_v39 }
 0xa1b   :  { %1502 = vadd.xlane.f32.xlu2 %v1501_v21 }
 0xa7e   :  { %v1490_v1 = vpop.xlane.xlu2 %1489  ;;  %v1493_v31 = vpop.xlane.xlu1 %1492 }
 0xa7f   :  { %v1494_v35 = vmul.f32 %v1490_v1, %v2314_v34  ;;  %v1495_v14 = vmul.f32 %v1493_v31, %v2314_v34 }
 0xa81   :  { %v1506_v20 = vmul.f32 %v1494_v35, %v1494_v35  ;;  %v1507_v18 = vmul.f32 %v1495_v14, %v1495_v14  ;;  %v1510_v2 = vsub.f32 %v1486_v24, %v1494_v35  ;;  %v1511_v51 = vsub.f32 %v1487_v3, %v1495_v14 }
 0xa86   :  { %v1500_v32 = vpop.xlane.xlu2 %1499 }
 0xa87   :  { %v1504_v63 = vmul.f32 %v1500_v32, %v2314_v34 }
 0xa89   :  { %v1508_v4 = vsub.f32 %v1504_v63, %v1506_v20 }
 0xa8b   :  { %v1512_v48 = vadd.f32 1e-06, %v1508_v4 }
 0xa8d   :  { %1951 = vrsqrt.f32 %v1512_v48  ;;  %vm1520_vm2 = vweird.f32 %v1512_v48 }
 0xa8e   :  { %v1503_v13 = vpop.xlane.xlu2 %1502 }
 0xa8f   :  { %v1505_v0 = vmul.f32 %v1503_v13, %v2314_v34 }
 0xa91   :  { %v1509_v42 = vsub.f32 %v1505_v0, %v1507_v18 }
 0xa93   :  { %v1952_v26 = vpop.eup %1951  ;;  %v1513_v12 = vadd.f32 1e-06, %v1509_v42 }
 0xa94   :  { %v1515_v27 = vmul.f32 %v1952_v26, %v1512_v48  ;;  %vm1521_vm1 = vweird.f32 %v1952_v26 }
 0xa95   :  { %1953 = vrsqrt.f32 %v1513_v12  ;;  %vm1522_vm4 = vmor %vm1520_vm2, %vm1521_vm1  ;;  %vm1530_vm6 = vweird.f32 %v1513_v12 }
 0xa96   :  { %v1516_v19 = vmul.f32 %v1952_v26, %v1515_v27 }
 0xa98   :  { %v1517_v44 = vmul.f32 0.5, %v1516_v19 }
 0xa9a   :  { %v1518_v57 = vsub.f32 1.5, %v1517_v44 }
 0xa9b   :  { %v1954_v36 = vpop.eup %1953 }
 0xa9c   :  { %v1519_v37 = vmul.f32 %v1952_v26, %v1518_v57  ;;  %v1525_v43 = vmul.f32 %v1954_v36, %v1513_v12  ;;  %vm1531_vm5 = vweird.f32 %v1954_v36 }
 0xa9d   :  { %vm1532_vm7 = vmor %vm1530_vm6, %vm1531_vm5 }
 0xa9e   :  { %v1526_v41 = vmul.f32 %v1954_v36, %v1525_v43  ;;  %v1523_v61 = vsel %vm1522_vm4, %v1952_v26, %v1519_v37  ;;  %v87_v43 = vld [vmem:[#allocation5 + $0x50] sm:$0xff] }
 0xa9f   :  { %v1534_v40 = vmul.f32 %v1523_v61, %v1510_v2 }
 0xaa0   :  { %v1527_v49 = vmul.f32 0.5, %v1526_v41 }
 0xaa1   :  { %v1536_v53 = vmul.f32 %v1963_v17, %v1534_v40 }
 0xaa2   :  { %v1528_v11 = vsub.f32 1.5, %v1527_v49 }
 0xaa3   :  { %v1538_v29 = vadd.f32 %v1536_v53, %v2329_v8 }
 0xaa4   :  { %v1529_v47 = vmul.f32 %v1954_v36, %v1528_v11 }
 0xaa6   :  { %v1533_v15 = vsel %vm1532_vm7, %v1954_v36, %v1529_v47 }
 0xaa7   :  { %v1535_v62 = vmul.f32 %v1533_v15, %v1511_v51 }
 0xaa9   :  { %v1537_v28 = vmul.f32 %v1964_v33, %v1535_v62 }
 0xaab   :  { %v1539_v9 = vadd.f32 %v1537_v28, %v2331_v10 }
 0xaad   :  { %v1540_v54 = vpack.c.bf16 %v1539_v9, %v1538_v29 }
 0xaaf   :  { %1792 = vmatmul.msk.bf16.vlgmr.msrb.gmra.mxu2 %vm110_vm0, %v1540_v54 }
 0xb32   :  { %v1553_v38 = vpop.f32.mrf.mxu2 }
 0xb33   :  { %v1554_v45 = vadd.f32 %v1553_v38, %v2360_v6 }
 0xb35   :  { %v1558_v24 = vmax.f32 %v1554_v45, 0.0  ;;  %v88_v45 = vld [vmem:[#allocation5 + $0x58] sm:$0xff] }
 0xb3a   :  { %v1555_v52 = vpop.f32.mrf.mxu2 }
 0xb3b   :  { %v1556_v22 = vadd.f32 %v1555_v52, %v2362_v25 }
 0xb3d   :  { %v1559_v3 = vmax.f32 %v1556_v22, 0.0 }
 0xb3f   :  { %v1560_v59 = vpack.c.bf16 %v1559_v3, %v1558_v24 }
 0xb41   :  { %1793 = vmatmul.msk.bf16.vlgmr.msrb.gmra.mxu3 %vm826_vm10, %v1560_v59 }
 0xbc4   :  { %v1573_v60 = vpop.f32.mrf.mxu3 }
 0xbc5   :  { %v1574_v58 = vadd.f32 %v1573_v60, %v2367_v30 }
 0xbc7   :  { %v1578_v8 = vadd.f32 %v1574_v58, %v1538_v29 }
 0xbc9   :  { %v1580_v10 = vsel %vm110_vm0, %v1578_v8, 0.0  ;;  %v1588_v16 = vmul.f32 %v1578_v8, %v1578_v8 }
 0xbca   :  { %1581 = vadd.xlane.f32.xlu0 %v1580_v10 }
 0xbcb   :  { %v1590_v56 = vsel %vm110_vm0, %v1588_v16, 0.0 }
 0xbcc   :  { %v1575_v39 = vpop.f32.mrf.mxu3  ;;  %1591 = vadd.xlane.f32.xlu2 %v1590_v56 }
 0xbcd   :  { %v1576_v6 = vadd.f32 %v1575_v39, %v2371_v23 }
 0xbcf   :  { %v1579_v25 = vadd.f32 %v1576_v6, %v1539_v9 }
 0xbd1   :  { %v1583_v5 = vsel %vm110_vm0, %v1579_v25, 0.0  ;;  %v1589_v21 = vmul.f32 %v1579_v25, %v1579_v25 }
 0xbd3   :  { %v1593_v1 = vsel %vm110_vm0, %v1589_v21, 0.0 }
 0xbd4   :  { %1584 = vadd.xlane.f32.xlu2 %v1583_v5 }
 0xbdc   :  { %1594 = vadd.xlane.f32.xlu2 %v1593_v1 }
 0xbde   :  { %1684 = vrot.lane.b32.xlu0 %v87_v43, %s2051_s25 }
 0xc3d   :  { %v1582_v30 = vpop.xlane.xlu0 %1581 }
 0xc3e   :  { %v1586_v35 = vmul.f32 %v1582_v30, %v2314_v34 }
 0xc3f   :  { %v1592_v32 = vpop.xlane.xlu2 %1591 }
 0xc40   :  { %v1598_v20 = vmul.f32 %v1586_v35, %v1586_v35  ;;  %v1596_v63 = vmul.f32 %v1592_v32, %v2314_v34  ;;  %v1602_v36 = vsub.f32 %v1578_v8, %v1586_v35 }
 0xc42   :  { %v1600_v31 = vsub.f32 %v1596_v63, %v1598_v20 }
 0xc44   :  { %v1604_v4 = vadd.f32 1e-06, %v1600_v31 }
 0xc46   :  { %1955 = vrsqrt.f32 %v1604_v4  ;;  %vm1612_vm9 = vweird.f32 %v1604_v4 }
 0xc47   :  { %v1585_v14 = vpop.xlane.xlu2 %1584 }
 0xc48   :  { %v1587_v48 = vmul.f32 %v1585_v14, %v2314_v34 }
 0xc4a   :  { %v1599_v42 = vmul.f32 %v1587_v48, %v1587_v48  ;;  %v1603_v62 = vsub.f32 %v1579_v25, %v1587_v48 }
 0xc4c   :  { %v1956_v23 = vpop.eup %1955 }
 0xc4d   :  { %v1607_v13 = vmul.f32 %v1956_v23, %v1604_v4  ;;  %vm1613_vm8 = vweird.f32 %v1956_v23 }
 0xc4e   :  { %vm1614_vm10 = vmor %vm1612_vm9, %vm1613_vm8 }
 0xc4f   :  { %v1608_v18 = vmul.f32 %v1956_v23, %v1607_v13  ;;  %v1595_v0 = vpop.xlane.xlu2 %1594 }
 0xc50   :  { %v1597_v26 = vmul.f32 %v1595_v0, %v2314_v34  ;;  %v1685_v63 = vpop.permute.xlu0 %1684 }
 0xc51   :  { %v1609_v12 = vmul.f32 0.5, %v1608_v18 }
 0xc52   :  { %v1601_v27 = vsub.f32 %v1597_v26, %v1599_v42 }
 0xc53   :  { %v1610_v19 = vsub.f32 1.5, %v1609_v12 }
 0xc54   :  { %v1605_v44 = vadd.f32 1e-06, %v1601_v27 }
 0xc55   :  { %v1611_v57 = vmul.f32 %v1956_v23, %v1610_v19 }
 0xc56   :  { %1957 = vrsqrt.f32 %v1605_v44  ;;  %vm1622_vm12 = vweird.f32 %v1605_v44 }
 0xc57   :  { %v1615_v37 = vsel %vm1614_vm10, %v1956_v23, %v1611_v57 }
 0xc58   :  { %v1626_v41 = vmul.f32 %v1615_v37, %v1602_v36 }
 0xc5a   :  { %v1628_v61 = vmul.f32 %v1626_v41, %v2376_v46 }
 0xc5c   :  { %v1958_v49 = vpop.eup %1957  ;;  %v1630_v2 = vadd.f32 %v1628_v61, %v2387_v55 }
 0xc5d   :  { %v1617_v11 = vmul.f32 %v1958_v49, %v1605_v44  ;;  %vm1623_vm11 = vweird.f32 %v1958_v49 }
 0xc5e   :  { %v1632_v40 = vsel %vm110_vm0, %v1630_v2, 0.0  ;;  %v1640_v15 = vmul.f32 %v1630_v2, %v1630_v2  ;;  %vm1624_vm13 = vmor %vm1622_vm12, %vm1623_vm11 }
 0xc5f   :  { %v1618_v47 = vmul.f32 %v1958_v49, %v1617_v11  ;;  %1633 = vadd.xlane.f32.xlu1 %v1632_v40 }
 0xc60   :  { %v1642_v33 = vsel %vm110_vm0, %v1640_v15, 0.0 }
 0xc61   :  { %v1619_v51 = vmul.f32 0.5, %v1618_v47 }
 0xc63   :  { %v1620_v17 = vsub.f32 1.5, %v1619_v51 }
 0xc65   :  { %v1621_v53 = vmul.f32 %v1958_v49, %v1620_v17 }
 0xc67   :  { %1643 = vadd.xlane.f32.xlu1 %v1642_v33  ;;  %v1625_v46 = vsel %vm1624_vm13, %v1958_v49, %v1621_v53 }
 0xc68   :  { %v1627_v28 = vmul.f32 %v1625_v46, %v1603_v62 }
 0xc6a   :  { %v1629_v55 = vmul.f32 %v1627_v28, %v2381_v50 }
 0xc6c   :  { %v1631_v29 = vadd.f32 %v1629_v55, %v2392_v7 }
 0xc6e   :  { %v1635_v9 = vsel %vm110_vm0, %v1631_v29, 0.0  ;;  %v1641_v54 = vmul.f32 %v1631_v29, %v1631_v29 }
 0xc6f   :  { %1636 = vadd.xlane.f32.xlu2 %v1635_v9 }
 0xc70   :  { %v1645_v38 = vsel %vm110_vm0, %v1641_v54, 0.0 }
 0xc77   :  { %1646 = vadd.xlane.f32.xlu2 %v1645_v38 }
 0xc80   :  { %1686 = vrot.lane.b32.xlu1 %v88_v45, %s2051_s25 }
 0xcd2   :  { %v1634_v52 = vpop.xlane.xlu1 %1633 }
 0xcd3   :  { %v1638_v22 = vmul.f32 %v1634_v52, %v2314_v34 }
 0xcd5   :  { %v1650_v3 = vmul.f32 %v1638_v22, %v1638_v22  ;;  %v1654_v35 = vsub.f32 %v1630_v2, %v1638_v22 }
 0xcda   :  { %v1644_v24 = vpop.xlane.xlu1 %1643 }
 0xcdb   :  { %v1648_v59 = vmul.f32 %v1644_v24, %v2314_v34 }
 0xcdd   :  { %v1652_v50 = vsub.f32 %v1648_v59, %v1650_v3 }
 0xcdf   :  { %v1656_v60 = vadd.f32 1e-06, %v1652_v50 }
 0xce1   :  { %1959 = vrsqrt.f32 %v1656_v60  ;;  %vm1664_vm15 = vweird.f32 %v1656_v60 }
 0xce2   :  { %v1637_v7 = vpop.xlane.xlu2 %1636 }
 0xce3   :  { %v1639_v8 = vmul.f32 %v1637_v7, %v2314_v34 }
 0xce5   :  { %v1651_v39 = vmul.f32 %v1639_v8, %v1639_v8  ;;  %v1655_v0 = vsub.f32 %v1631_v29, %v1639_v8 }
 0xce7   :  { %v1960_v58 = vpop.eup %1959 }
 0xce8   :  { %v1659_v10 = vmul.f32 %v1960_v58, %v1656_v60  ;;  %vm1665_vm14 = vweird.f32 %v1960_v58 }
 0xce9   :  { %vm1666_vm3 = vmor %vm1664_vm15, %vm1665_vm14 }
 0xcea   :  { %v1660_v16 = vmul.f32 %v1960_v58, %v1659_v10  ;;  %v1647_v56 = vpop.xlane.xlu2 %1646 }
 0xceb   :  { %v1649_v6 = vmul.f32 %v1647_v56, %v2314_v34 }
 0xcec   :  { %v1661_v25 = vmul.f32 0.5, %v1660_v16 }
 0xced   :  { %v1653_v5 = vsub.f32 %v1649_v6, %v1651_v39 }
 0xcee   :  { %v1662_v21 = vsub.f32 1.5, %v1661_v25 }
 0xcef   :  { %v1657_v1 = vadd.f32 1e-06, %v1653_v5 }
 0xcf0   :  { %v1663_v30 = vmul.f32 %v1960_v58, %v1662_v21 }
 0xcf1   :  { %1961 = vrsqrt.f32 %v1657_v1  ;;  %vm1674_vm2 = vweird.f32 %v1657_v1 }
 0xcf2   :  { %v1667_v32 = vsel %vm1666_vm3, %v1960_v58, %v1663_v30  ;;  %v1687_v12 = vpop.permute.xlu1 %1686 }
 0xcf3   :  { %v1678_v20 = vmul.f32 %v1667_v32, %v1654_v35 }
 0xcf5   :  { %v1680_v31 = vmul.f32 %v1678_v20, %v87_v43 }
 0xcf7   :  { %v1962_v4 = vpop.eup %1961  ;;  %v1690_v14 = vadd.f32 %v1685_v63, %v1680_v31 }
 0xcf8   :  { %v1669_v23 = vmul.f32 %v1962_v4, %v1657_v1  ;;  %vm1675_vm1 = vweird.f32 %v1962_v4 }
 0xcf9   :  { %1692 = vst.msk [vmem:[#allocation7] sm:$0xff] %vm110_vm0, %v1690_v14  ;;  %vm1676_vm4 = vmor %vm1674_vm2, %vm1675_vm1 }
 0xcfa   :  { %v1670_v34 = vmul.f32 %v1962_v4, %v1669_v23 }
 0xcfc   :  { %v1671_v48 = vmul.f32 0.5, %v1670_v34 }
 0xcfe   :  { %v1672_v13 = vsub.f32 1.5, %v1671_v48 }
 0xd00   :  { %v1673_v18 = vmul.f32 %v1962_v4, %v1672_v13 }
 0xd02   :  { %v1677_v42 = vsel %vm1676_vm4, %v1962_v4, %v1673_v18 }
 0xd03   :  { %v1679_v26 = vmul.f32 %v1677_v42, %v1655_v0 }
 0xd05   :  { %v1681_v27 = vmul.f32 %v1679_v26, %v88_v45 }
 0xd07   :  { %v1691_v19 = vadd.f32 %v1687_v12, %v1681_v27 }
 0xd09   :  { %1693 = vst.msk [vmem:[#allocation7 + $0x8] sm:$0xff] %vm110_vm0, %v1691_v19 }
 0xd0a   :  { %1706 = dma.vmem_to_hbm [thread:$0]  %s1699_s26, 256, %s1701_s14, [#allocation4], %s2047_s30, %s2047_s30, %s2048_s6  }
 0xd0b   :  { %2041 = dma.done.wait [#allocation4], 256  }
 0xd0c   :  { %2042 = vsyncadd [#allocation4], 4294967040 }
 0xd0d   :  { %1711 = vsyncpa [#allocation3], 1 }
 0xd0e   :  { %1712 = vsyncpa [#allocation6], 1 }
 0xd0f   :  { %1713 = vsyncpa [#allocation4], 1 }

</bundles_post_ra>
